<compile_context>
chip_gen: v5e
topology: v5e:2x2
jax: 0.10.0
libtpu: 0.0.40
codegen_flags: <defaults>
</compile_context>

<pallas_src>
import jax
import jax.numpy as jnp
import numpy as np
from jax import lax
from jax.experimental import pallas as pl
from jax.experimental.pallas import tpu as pltpu


def _make_dwpw_kernel(C, k, Ho, Lo, out_dtype):
    """Kernel factory.

    Per grid step (lane index m = (bt*Co + co)*W + w):
      x_ref : (1, C, H, Lo + k - 1)  VMEM  lane-packed input (channel planes
                                            replicated over the Co slots)
      wd_ref: (C, k*k + 1)           SMEM  depthwise taps (row-major) + bias
      pw_ref: (C + 1, Lo)            VMEM  per-lane pointwise weights + bias row
      o_ref : (1, Ho, Lo)            VMEM  lane-packed output slab
    """

    def kernel(x_ref, wd_ref, pw_ref, o_ref):
        pw = pw_ref[...]                                    # (C+1, Lo) f32, read once

        slab = None
        for c in range(C):
            # Single hoisted cast per channel (never per tap).
            xc = x_ref[0, c].astype(jnp.float32)            # (H, Lo + k - 1)
            # Hoist the kw lane shifts out of the tap loop: k shifted views.
            xs = [xc[:, kw:kw + Lo] for kw in range(k)]     # each (H, Lo)

            # Depthwise conv (VALID, stride 1): VPU MAC, scalar tap weights (SMEM).
            acc = xs[0][0:Ho, :] * wd_ref[c, 0]             # init from tap (0, 0)
            for t in range(1, k * k):
                kh, kw = divmod(t, k)
                acc = acc + xs[kw][kh:kh + Ho, :] * wd_ref[c, t]
            dwc = acc + wd_ref[c, k * k]                    # depthwise bias, (Ho, Lo)

            # Pointwise 1x1: per-lane weight vector (lane already encodes co).
            contrib = dwc * pw[c][None, :]
            slab = contrib if slab is None else slab + contrib

        slab = slab + pw[C][None, :]                        # per-lane pointwise bias
        o_ref[0] = slab.astype(out_dtype)                   # ONE dense store per step

    return kernel


def deepwise_pointwise_conv(x_nchw, wd_oihw, bd, wp_oihw, bp,
                            *, max_block_bytes=4 << 20):
    """x_nchw: (B, C, H, W); wd_oihw: (C, 1, k, k); wp_oihw: (Co, C, 1, 1)."""
    B, C, H, W = x_nchw.shape
    k = wd_oihw.shape[-1]
    Co = wp_oihw.shape[0]
    Ho, Wo = H - k + 1, W - k + 1

    # ---- grid-step sizing: amortize the ~0.35us/step overhead, keep >=2 steps
    #      when B >= 2 so v7x's two TensorCores both get work. ----
    per_batch_bytes = C * H * Co * W * 4            # packed f32 block per batch elem
    max_bt = max(1, max_block_bytes // per_batch_bytes)
    S = max(min(B, 2), pl.cdiv(B, max_bt))          # number of grid steps
    Bt = pl.cdiv(B, S)                              # batch elements per step
    Bp = S * Bt
    if Bp != B:                                     # pad batch to a multiple of Bt
        x_nchw = jnp.concatenate(
            [x_nchw, jnp.zeros((Bp - B, C, H, W), x_nchw.dtype)], axis=0)

    Lo = Bt * Co * W                                # lane width of the packed slab
    Lp = Lo + (k - 1)                               # + zero pad for the kw shifts

    # ---- wrapper-side lane packing (layout plumbing only) ----
    # xp[s, c, h, (bt*Co + co)*W + w] = x[s*Bt + bt, c, h, w]   (replicated over co)
    xp = x_nchw.reshape(S, Bt, C, H, W).transpose(0, 2, 3, 1, 4)        # (S,C,H,Bt,W)
    xp = jnp.broadcast_to(xp[:, :, :, :, None, :], (S, C, H, Bt, Co, W))
    xp = xp.reshape(S, C, H, Lo)
    xp = jnp.pad(xp, ((0, 0), (0, 0), (0, 0), (0, k - 1)))              # (S,C,H,Lp)

    # Depthwise taps + bias packed into one SMEM array (C, k*k + 1).
    wd_pack = jnp.concatenate(
        [wd_oihw.reshape(C, k * k), bd.reshape(C, 1)], axis=1).astype(jnp.float32)

    # Pointwise weights + bias packed into one per-lane VMEM array (C+1, Lo):
    #   pwv[c, (bt*Co+co)*W + w] = wp[co, c]    ;    pwv[C, ...] = bp[co]
    wpb = jnp.concatenate(
        [wp_oihw.reshape(Co, C), bp.reshape(Co, 1)], axis=1).astype(jnp.float32)
    pwv = jnp.broadcast_to(wpb[None, :, None, :], (Bt, Co, W, C + 1))
    pwv = pwv.reshape(Lo, C + 1).T                                      # (C+1, Lo)

    kernel = _make_dwpw_kernel(C, k, Ho, Lo, x_nchw.dtype)

    out_packed = pl.pallas_call(
        kernel,
        out_shape=jax.ShapeDtypeStruct((S, Ho, Lo), x_nchw.dtype),
        grid_spec=pltpu.PrefetchScalarGridSpec(
            num_scalar_prefetch=0,
            grid=(S,),
            in_specs=[
                pl.BlockSpec((1, C, H, Lp), lambda s: (s, 0, 0, 0)),
                pl.BlockSpec(memory_space=pltpu.MemorySpace.SMEM),      # dw taps+bias
                pl.BlockSpec((C + 1, Lo), lambda s: (0, 0)),            # pw per-lane
            ],
            out_specs=pl.BlockSpec((1, Ho, Lo), lambda s: (s, 0, 0)),
        ),
        compiler_params=pltpu.CompilerParams(dimension_semantics=("parallel",)),
    )(xp, wd_pack, pwv)

    # ---- wrapper-side unpack to NCHW ----
    out = out_packed.reshape(S, Ho, Bt, Co, W)[..., :Wo]                # drop garbage w
    out = out.transpose(0, 2, 3, 1, 4).reshape(Bp, Co, Ho, Wo)[:B]
    return out


def _reference(x, wd, bd, wp, bp):
    C = x.shape[1]
    dn = ("NCHW", "OIHW", "NCHW")
    y = lax.conv_general_dilated(x, wd, (1, 1), "VALID",
                                 feature_group_count=C, dimension_numbers=dn)
    y = y + bd[None, :, None, None]
    z = lax.conv_general_dilated(y, wp, (1, 1), "VALID", dimension_numbers=dn)
    z = z + bp[None, :, None, None]
    return z


if __name__ == "__main__":
    B, C, H, W = 2, 4, 16, 16
    Co, k = 8, 3

    key = jax.random.PRNGKey(0)
    kx, k1, k2, k3, k4 = jax.random.split(key, 5)
    x = jax.random.normal(kx, (B, C, H, W), jnp.float32)
    wd = jax.random.normal(k1, (C, 1, k, k), jnp.float32) * 0.1   # depthwise weight
    bd = jax.random.normal(k2, (C,), jnp.float32) * 0.1           # depthwise bias
    wp = jax.random.normal(k3, (Co, C, 1, 1), jnp.float32) * 0.1  # pointwise weight
    bp = jax.random.normal(k4, (Co,), jnp.float32) * 0.1          # pointwise bias

    out = deepwise_pointwise_conv(x, wd, bd, wp, bp)
    out = jax.block_until_ready(out)

    ref = _reference(x, wd, bd, wp, bp)
    assert out.shape == (B, Co, H - k + 1, W - k + 1), out.shape
    np.testing.assert_allclose(np.asarray(out), np.asarray(ref), rtol=1e-4, atol=1e-4)
    print("KERNEL_OK")
</pallas_src>

<mosaic_0001>
module attributes {stable_mosaic.version = 11 : i64} {
  func.func @kernel(%arg0: i32, %arg1: memref<1x4x16x130xf32, #tpu.memory_space<vmem>>, %arg2: memref<4x10xf32, #tpu.memory_space<smem>>, %arg3: memref<5x128xf32, #tpu.memory_space<vmem>>, %arg4: memref<1x14x128xf32, #tpu.memory_space<vmem>>) attributes {dimension_semantics = [#tpu.dimension_semantics<parallel>], iteration_bounds = array<i64: 2>, scalar_prefetch = 0 : i64, scratch_operands = 0 : i64, tpu.core_type = #tpu.core_type<tc>, window_params = [{transform_indices = @transform_0, window_bounds = array<i64: 1, 4, 16, 130>}, {transform_indices = @transform_1, window_bounds = array<i64: 4, 10>}, {pipeline_mode = #tpu.pipeline_mode<synchronous>, transform_indices = @transform_2, window_bounds = array<i64: 5, 128>}, {transform_indices = @transform_3, window_bounds = array<i64: 1, 14, 128>}]} {
    %c0 = arith.constant 0 : index
    %c0_0 = arith.constant 0 : index
    %0 = vector.load %arg3[%c0, %c0_0] : memref<5x128xf32, #tpu.memory_space<vmem>>, vector<5x128xf32>
    %c0_1 = arith.constant 0 : index
    %c0_2 = arith.constant 0 : index
    %c0_3 = arith.constant 0 : index
    %c0_4 = arith.constant 0 : index
    %1 = vector.load %arg1[%c0_1, %c0_2, %c0_3, %c0_4] : memref<1x4x16x130xf32, #tpu.memory_space<vmem>>, vector<1x1x16x130xf32>
    %2 = vector.shape_cast %1 : vector<1x1x16x130xf32> to vector<16x130xf32>
    %3 = vector.extract_strided_slice %2 {offsets = [0, 0], sizes = [16, 128], strides = [1, 1]} : vector<16x130xf32> to vector<16x128xf32>
    %4 = vector.extract_strided_slice %2 {offsets = [0, 1], sizes = [16, 128], strides = [1, 1]} : vector<16x130xf32> to vector<16x128xf32>
    %5 = vector.extract_strided_slice %2 {offsets = [0, 2], sizes = [16, 128], strides = [1, 1]} : vector<16x130xf32> to vector<16x128xf32>
    %6 = vector.extract_strided_slice %3 {offsets = [0, 0], sizes = [14, 128], strides = [1, 1]} : vector<16x128xf32> to vector<14x128xf32>
    %c0_5 = arith.constant 0 : index
    %c0_6 = arith.constant 0 : index
    %7 = memref.load %arg2[%c0_5, %c0_6] : memref<4x10xf32, #tpu.memory_space<smem>>
    %8 = vector.broadcast %7 : f32 to vector<14x128xf32>
    %9 = arith.mulf %6, %8 : vector<14x128xf32>
    %10 = vector.extract_strided_slice %4 {offsets = [0, 0], sizes = [14, 128], strides = [1, 1]} : vector<16x128xf32> to vector<14x128xf32>
    %c0_7 = arith.constant 0 : index
    %c1 = arith.constant 1 : index
    %11 = memref.load %arg2[%c0_7, %c1] : memref<4x10xf32, #tpu.memory_space<smem>>
    %12 = vector.broadcast %11 : f32 to vector<14x128xf32>
    %13 = arith.mulf %10, %12 : vector<14x128xf32>
    %14 = arith.addf %9, %13 : vector<14x128xf32>
    %15 = vector.extract_strided_slice %5 {offsets = [0, 0], sizes = [14, 128], strides = [1, 1]} : vector<16x128xf32> to vector<14x128xf32>
    %c0_8 = arith.constant 0 : index
    %c2 = arith.constant 2 : index
    %16 = memref.load %arg2[%c0_8, %c2] : memref<4x10xf32, #tpu.memory_space<smem>>
    %17 = vector.broadcast %16 : f32 to vector<14x128xf32>
    %18 = arith.mulf %15, %17 : vector<14x128xf32>
    %19 = arith.addf %14, %18 : vector<14x128xf32>
    %20 = vector.extract_strided_slice %3 {offsets = [1, 0], sizes = [14, 128], strides = [1, 1]} : vector<16x128xf32> to vector<14x128xf32>
    %c0_9 = arith.constant 0 : index
    %c3 = arith.constant 3 : index
    %21 = memref.load %arg2[%c0_9, %c3] : memref<4x10xf32, #tpu.memory_space<smem>>
    %22 = vector.broadcast %21 : f32 to vector<14x128xf32>
    %23 = arith.mulf %20, %22 : vector<14x128xf32>
    %24 = arith.addf %19, %23 : vector<14x128xf32>
    %25 = vector.extract_strided_slice %4 {offsets = [1, 0], sizes = [14, 128], strides = [1, 1]} : vector<16x128xf32> to vector<14x128xf32>
    %c0_10 = arith.constant 0 : index
    %c4 = arith.constant 4 : index
    %26 = memref.load %arg2[%c0_10, %c4] : memref<4x10xf32, #tpu.memory_space<smem>>
    %27 = vector.broadcast %26 : f32 to vector<14x128xf32>
    %28 = arith.mulf %25, %27 : vector<14x128xf32>
    %29 = arith.addf %24, %28 : vector<14x128xf32>
    %30 = vector.extract_strided_slice %5 {offsets = [1, 0], sizes = [14, 128], strides = [1, 1]} : vector<16x128xf32> to vector<14x128xf32>
    %c0_11 = arith.constant 0 : index
    %c5 = arith.constant 5 : index
    %31 = memref.load %arg2[%c0_11, %c5] : memref<4x10xf32, #tpu.memory_space<smem>>
    %32 = vector.broadcast %31 : f32 to vector<14x128xf32>
    %33 = arith.mulf %30, %32 : vector<14x128xf32>
    %34 = arith.addf %29, %33 : vector<14x128xf32>
    %35 = vector.extract_strided_slice %3 {offsets = [2, 0], sizes = [14, 128], strides = [1, 1]} : vector<16x128xf32> to vector<14x128xf32>
    %c0_12 = arith.constant 0 : index
    %c6 = arith.constant 6 : index
    %36 = memref.load %arg2[%c0_12, %c6] : memref<4x10xf32, #tpu.memory_space<smem>>
    %37 = vector.broadcast %36 : f32 to vector<14x128xf32>
    %38 = arith.mulf %35, %37 : vector<14x128xf32>
    %39 = arith.addf %34, %38 : vector<14x128xf32>
    %40 = vector.extract_strided_slice %4 {offsets = [2, 0], sizes = [14, 128], strides = [1, 1]} : vector<16x128xf32> to vector<14x128xf32>
    %c0_13 = arith.constant 0 : index
    %c7 = arith.constant 7 : index
    %41 = memref.load %arg2[%c0_13, %c7] : memref<4x10xf32, #tpu.memory_space<smem>>
    %42 = vector.broadcast %41 : f32 to vector<14x128xf32>
    %43 = arith.mulf %40, %42 : vector<14x128xf32>
    %44 = arith.addf %39, %43 : vector<14x128xf32>
    %45 = vector.extract_strided_slice %5 {offsets = [2, 0], sizes = [14, 128], strides = [1, 1]} : vector<16x128xf32> to vector<14x128xf32>
    %c0_14 = arith.constant 0 : index
    %c8 = arith.constant 8 : index
    %46 = memref.load %arg2[%c0_14, %c8] : memref<4x10xf32, #tpu.memory_space<smem>>
    %47 = vector.broadcast %46 : f32 to vector<14x128xf32>
    %48 = arith.mulf %45, %47 : vector<14x128xf32>
    %49 = arith.addf %44, %48 : vector<14x128xf32>
    %c0_15 = arith.constant 0 : index
    %c9 = arith.constant 9 : index
    %50 = memref.load %arg2[%c0_15, %c9] : memref<4x10xf32, #tpu.memory_space<smem>>
    %51 = vector.broadcast %50 : f32 to vector<14x128xf32>
    %52 = arith.addf %49, %51 : vector<14x128xf32>
    %53 = vector.extract_strided_slice %0 {offsets = [0, 0], sizes = [1, 128], strides = [1, 1]} : vector<5x128xf32> to vector<1x128xf32>
    %54 = vector.shape_cast %53 : vector<1x128xf32> to vector<128xf32>
    %55 = vector.shape_cast %54 : vector<128xf32> to vector<1x128xf32>
    %56 = vector.broadcast %55 : vector<1x128xf32> to vector<14x128xf32>
    %57 = arith.mulf %52, %56 : vector<14x128xf32>
    %c0_16 = arith.constant 0 : index
    %c1_17 = arith.constant 1 : index
    %c0_18 = arith.constant 0 : index
    %c0_19 = arith.constant 0 : index
    %58 = vector.load %arg1[%c0_16, %c1_17, %c0_18, %c0_19] : memref<1x4x16x130xf32, #tpu.memory_space<vmem>>, vector<1x1x16x130xf32>
    %59 = vector.shape_cast %58 : vector<1x1x16x130xf32> to vector<16x130xf32>
    %60 = vector.extract_strided_slice %59 {offsets = [0, 0], sizes = [16, 128], strides = [1, 1]} : vector<16x130xf32> to vector<16x128xf32>
    %61 = vector.extract_strided_slice %59 {offsets = [0, 1], sizes = [16, 128], strides = [1, 1]} : vector<16x130xf32> to vector<16x128xf32>
    %62 = vector.extract_strided_slice %59 {offsets = [0, 2], sizes = [16, 128], strides = [1, 1]} : vector<16x130xf32> to vector<16x128xf32>
    %63 = vector.extract_strided_slice %60 {offsets = [0, 0], sizes = [14, 128], strides = [1, 1]} : vector<16x128xf32> to vector<14x128xf32>
    %c1_20 = arith.constant 1 : index
    %c0_21 = arith.constant 0 : index
    %64 = memref.load %arg2[%c1_20, %c0_21] : memref<4x10xf32, #tpu.memory_space<smem>>
    %65 = vector.broadcast %64 : f32 to vector<14x128xf32>
    %66 = arith.mulf %63, %65 : vector<14x128xf32>
    %67 = vector.extract_strided_slice %61 {offsets = [0, 0], sizes = [14, 128], strides = [1, 1]} : vector<16x128xf32> to vector<14x128xf32>
    %c1_22 = arith.constant 1 : index
    %c1_23 = arith.constant 1 : index
    %68 = memref.load %arg2[%c1_22, %c1_23] : memref<4x10xf32, #tpu.memory_space<smem>>
    %69 = vector.broadcast %68 : f32 to vector<14x128xf32>
    %70 = arith.mulf %67, %69 : vector<14x128xf32>
    %71 = arith.addf %66, %70 : vector<14x128xf32>
    %72 = vector.extract_strided_slice %62 {offsets = [0, 0], sizes = [14, 128], strides = [1, 1]} : vector<16x128xf32> to vector<14x128xf32>
    %c1_24 = arith.constant 1 : index
    %c2_25 = arith.constant 2 : index
    %73 = memref.load %arg2[%c1_24, %c2_25] : memref<4x10xf32, #tpu.memory_space<smem>>
    %74 = vector.broadcast %73 : f32 to vector<14x128xf32>
    %75 = arith.mulf %72, %74 : vector<14x128xf32>
    %76 = arith.addf %71, %75 : vector<14x128xf32>
    %77 = vector.extract_strided_slice %60 {offsets = [1, 0], sizes = [14, 128], strides = [1, 1]} : vector<16x128xf32> to vector<14x128xf32>
    %c1_26 = arith.constant 1 : index
    %c3_27 = arith.constant 3 : index
    %78 = memref.load %arg2[%c1_26, %c3_27] : memref<4x10xf32, #tpu.memory_space<smem>>
    %79 = vector.broadcast %78 : f32 to vector<14x128xf32>
    %80 = arith.mulf %77, %79 : vector<14x128xf32>
    %81 = arith.addf %76, %80 : vector<14x128xf32>
    %82 = vector.extract_strided_slice %61 {offsets = [1, 0], sizes = [14, 128], strides = [1, 1]} : vector<16x128xf32> to vector<14x128xf32>
    %c1_28 = arith.constant 1 : index
    %c4_29 = arith.constant 4 : index
    %83 = memref.load %arg2[%c1_28, %c4_29] : memref<4x10xf32, #tpu.memory_space<smem>>
    %84 = vector.broadcast %83 : f32 to vector<14x128xf32>
    %85 = arith.mulf %82, %84 : vector<14x128xf32>
    %86 = arith.addf %81, %85 : vector<14x128xf32>
    %87 = vector.extract_strided_slice %62 {offsets = [1, 0], sizes = [14, 128], strides = [1, 1]} : vector<16x128xf32> to vector<14x128xf32>
    %c1_30 = arith.constant 1 : index
    %c5_31 = arith.constant 5 : index
    %88 = memref.load %arg2[%c1_30, %c5_31] : memref<4x10xf32, #tpu.memory_space<smem>>
    %89 = vector.broadcast %88 : f32 to vector<14x128xf32>
    %90 = arith.mulf %87, %89 : vector<14x128xf32>
    %91 = arith.addf %86, %90 : vector<14x128xf32>
    %92 = vector.extract_strided_slice %60 {offsets = [2, 0], sizes = [14, 128], strides = [1, 1]} : vector<16x128xf32> to vector<14x128xf32>
    %c1_32 = arith.constant 1 : index
    %c6_33 = arith.constant 6 : index
    %93 = memref.load %arg2[%c1_32, %c6_33] : memref<4x10xf32, #tpu.memory_space<smem>>
    %94 = vector.broadcast %93 : f32 to vector<14x128xf32>
    %95 = arith.mulf %92, %94 : vector<14x128xf32>
    %96 = arith.addf %91, %95 : vector<14x128xf32>
    %97 = vector.extract_strided_slice %61 {offsets = [2, 0], sizes = [14, 128], strides = [1, 1]} : vector<16x128xf32> to vector<14x128xf32>
    %c1_34 = arith.constant 1 : index
    %c7_35 = arith.constant 7 : index
    %98 = memref.load %arg2[%c1_34, %c7_35] : memref<4x10xf32, #tpu.memory_space<smem>>
    %99 = vector.broadcast %98 : f32 to vector<14x128xf32>
    %100 = arith.mulf %97, %99 : vector<14x128xf32>
    %101 = arith.addf %96, %100 : vector<14x128xf32>
    %102 = vector.extract_strided_slice %62 {offsets = [2, 0], sizes = [14, 128], strides = [1, 1]} : vector<16x128xf32> to vector<14x128xf32>
    %c1_36 = arith.constant 1 : index
    %c8_37 = arith.constant 8 : index
    %103 = memref.load %arg2[%c1_36, %c8_37] : memref<4x10xf32, #tpu.memory_space<smem>>
    %104 = vector.broadcast %103 : f32 to vector<14x128xf32>
    %105 = arith.mulf %102, %104 : vector<14x128xf32>
    %106 = arith.addf %101, %105 : vector<14x128xf32>
    %c1_38 = arith.constant 1 : index
    %c9_39 = arith.constant 9 : index
    %107 = memref.load %arg2[%c1_38, %c9_39] : memref<4x10xf32, #tpu.memory_space<smem>>
    %108 = vector.broadcast %107 : f32 to vector<14x128xf32>
    %109 = arith.addf %106, %108 : vector<14x128xf32>
    %110 = vector.extract_strided_slice %0 {offsets = [1, 0], sizes = [1, 128], strides = [1, 1]} : vector<5x128xf32> to vector<1x128xf32>
    %111 = vector.shape_cast %110 : vector<1x128xf32> to vector<128xf32>
    %112 = vector.shape_cast %111 : vector<128xf32> to vector<1x128xf32>
    %113 = vector.broadcast %112 : vector<1x128xf32> to vector<14x128xf32>
    %114 = arith.mulf %109, %113 : vector<14x128xf32>
    %115 = arith.addf %57, %114 : vector<14x128xf32>
    %c0_40 = arith.constant 0 : index
    %c2_41 = arith.constant 2 : index
    %c0_42 = arith.constant 0 : index
    %c0_43 = arith.constant 0 : index
    %116 = vector.load %arg1[%c0_40, %c2_41, %c0_42, %c0_43] : memref<1x4x16x130xf32, #tpu.memory_space<vmem>>, vector<1x1x16x130xf32>
    %117 = vector.shape_cast %116 : vector<1x1x16x130xf32> to vector<16x130xf32>
    %118 = vector.extract_strided_slice %117 {offsets = [0, 0], sizes = [16, 128], strides = [1, 1]} : vector<16x130xf32> to vector<16x128xf32>
    %119 = vector.extract_strided_slice %117 {offsets = [0, 1], sizes = [16, 128], strides = [1, 1]} : vector<16x130xf32> to vector<16x128xf32>
    %120 = vector.extract_strided_slice %117 {offsets = [0, 2], sizes = [16, 128], strides = [1, 1]} : vector<16x130xf32> to vector<16x128xf32>
    %121 = vector.extract_strided_slice %118 {offsets = [0, 0], sizes = [14, 128], strides = [1, 1]} : vector<16x128xf32> to vector<14x128xf32>
    %c2_44 = arith.constant 2 : index
    %c0_45 = arith.constant 0 : index
    %122 = memref.load %arg2[%c2_44, %c0_45] : memref<4x10xf32, #tpu.memory_space<smem>>
    %123 = vector.broadcast %122 : f32 to vector<14x128xf32>
    %124 = arith.mulf %121, %123 : vector<14x128xf32>
    %125 = vector.extract_strided_slice %119 {offsets = [0, 0], sizes = [14, 128], strides = [1, 1]} : vector<16x128xf32> to vector<14x128xf32>
    %c2_46 = arith.constant 2 : index
    %c1_47 = arith.constant 1 : index
    %126 = memref.load %arg2[%c2_46, %c1_47] : memref<4x10xf32, #tpu.memory_space<smem>>
    %127 = vector.broadcast %126 : f32 to vector<14x128xf32>
    %128 = arith.mulf %125, %127 : vector<14x128xf32>
    %129 = arith.addf %124, %128 : vector<14x128xf32>
    %130 = vector.extract_strided_slice %120 {offsets = [0, 0], sizes = [14, 128], strides = [1, 1]} : vector<16x128xf32> to vector<14x128xf32>
    %c2_48 = arith.constant 2 : index
    %c2_49 = arith.constant 2 : index
    %131 = memref.load %arg2[%c2_48, %c2_49] : memref<4x10xf32, #tpu.memory_space<smem>>
    %132 = vector.broadcast %131 : f32 to vector<14x128xf32>
    %133 = arith.mulf %130, %132 : vector<14x128xf32>
    %134 = arith.addf %129, %133 : vector<14x128xf32>
    %135 = vector.extract_strided_slice %118 {offsets = [1, 0], sizes = [14, 128], strides = [1, 1]} : vector<16x128xf32> to vector<14x128xf32>
    %c2_50 = arith.constant 2 : index
    %c3_51 = arith.constant 3 : index
    %136 = memref.load %arg2[%c2_50, %c3_51] : memref<4x10xf32, #tpu.memory_space<smem>>
    %137 = vector.broadcast %136 : f32 to vector<14x128xf32>
    %138 = arith.mulf %135, %137 : vector<14x128xf32>
    %139 = arith.addf %134, %138 : vector<14x128xf32>
    %140 = vector.extract_strided_slice %119 {offsets = [1, 0], sizes = [14, 128], strides = [1, 1]} : vector<16x128xf32> to vector<14x128xf32>
    %c2_52 = arith.constant 2 : index
    %c4_53 = arith.constant 4 : index
    %141 = memref.load %arg2[%c2_52, %c4_53] : memref<4x10xf32, #tpu.memory_space<smem>>
    %142 = vector.broadcast %141 : f32 to vector<14x128xf32>
    %143 = arith.mulf %140, %142 : vector<14x128xf32>
    %144 = arith.addf %139, %143 : vector<14x128xf32>
    %145 = vector.extract_strided_slice %120 {offsets = [1, 0], sizes = [14, 128], strides = [1, 1]} : vector<16x128xf32> to vector<14x128xf32>
    %c2_54 = arith.constant 2 : index
    %c5_55 = arith.constant 5 : index
    %146 = memref.load %arg2[%c2_54, %c5_55] : memref<4x10xf32, #tpu.memory_space<smem>>
    %147 = vector.broadcast %146 : f32 to vector<14x128xf32>
    %148 = arith.mulf %145, %147 : vector<14x128xf32>
    %149 = arith.addf %144, %148 : vector<14x128xf32>
    %150 = vector.extract_strided_slice %118 {offsets = [2, 0], sizes = [14, 128], strides = [1, 1]} : vector<16x128xf32> to vector<14x128xf32>
    %c2_56 = arith.constant 2 : index
    %c6_57 = arith.constant 6 : index
    %151 = memref.load %arg2[%c2_56, %c6_57] : memref<4x10xf32, #tpu.memory_space<smem>>
    %152 = vector.broadcast %151 : f32 to vector<14x128xf32>
    %153 = arith.mulf %150, %152 : vector<14x128xf32>
    %154 = arith.addf %149, %153 : vector<14x128xf32>
    %155 = vector.extract_strided_slice %119 {offsets = [2, 0], sizes = [14, 128], strides = [1, 1]} : vector<16x128xf32> to vector<14x128xf32>
    %c2_58 = arith.constant 2 : index
    %c7_59 = arith.constant 7 : index
    %156 = memref.load %arg2[%c2_58, %c7_59] : memref<4x10xf32, #tpu.memory_space<smem>>
    %157 = vector.broadcast %156 : f32 to vector<14x128xf32>
    %158 = arith.mulf %155, %157 : vector<14x128xf32>
    %159 = arith.addf %154, %158 : vector<14x128xf32>
    %160 = vector.extract_strided_slice %120 {offsets = [2, 0], sizes = [14, 128], strides = [1, 1]} : vector<16x128xf32> to vector<14x128xf32>
    %c2_60 = arith.constant 2 : index
    %c8_61 = arith.constant 8 : index
    %161 = memref.load %arg2[%c2_60, %c8_61] : memref<4x10xf32, #tpu.memory_space<smem>>
    %162 = vector.broadcast %161 : f32 to vector<14x128xf32>
    %163 = arith.mulf %160, %162 : vector<14x128xf32>
    %164 = arith.addf %159, %163 : vector<14x128xf32>
    %c2_62 = arith.constant 2 : index
    %c9_63 = arith.constant 9 : index
    %165 = memref.load %arg2[%c2_62, %c9_63] : memref<4x10xf32, #tpu.memory_space<smem>>
    %166 = vector.broadcast %165 : f32 to vector<14x128xf32>
    %167 = arith.addf %164, %166 : vector<14x128xf32>
    %168 = vector.extract_strided_slice %0 {offsets = [2, 0], sizes = [1, 128], strides = [1, 1]} : vector<5x128xf32> to vector<1x128xf32>
    %169 = vector.shape_cast %168 : vector<1x128xf32> to vector<128xf32>
    %170 = vector.shape_cast %169 : vector<128xf32> to vector<1x128xf32>
    %171 = vector.broadcast %170 : vector<1x128xf32> to vector<14x128xf32>
    %172 = arith.mulf %167, %171 : vector<14x128xf32>
    %173 = arith.addf %115, %172 : vector<14x128xf32>
    %c0_64 = arith.constant 0 : index
    %c3_65 = arith.constant 3 : index
    %c0_66 = arith.constant 0 : index
    %c0_67 = arith.constant 0 : index
    %174 = vector.load %arg1[%c0_64, %c3_65, %c0_66, %c0_67] : memref<1x4x16x130xf32, #tpu.memory_space<vmem>>, vector<1x1x16x130xf32>
    %175 = vector.shape_cast %174 : vector<1x1x16x130xf32> to vector<16x130xf32>
    %176 = vector.extract_strided_slice %175 {offsets = [0, 0], sizes = [16, 128], strides = [1, 1]} : vector<16x130xf32> to vector<16x128xf32>
    %177 = vector.extract_strided_slice %175 {offsets = [0, 1], sizes = [16, 128], strides = [1, 1]} : vector<16x130xf32> to vector<16x128xf32>
    %178 = vector.extract_strided_slice %175 {offsets = [0, 2], sizes = [16, 128], strides = [1, 1]} : vector<16x130xf32> to vector<16x128xf32>
    %179 = vector.extract_strided_slice %176 {offsets = [0, 0], sizes = [14, 128], strides = [1, 1]} : vector<16x128xf32> to vector<14x128xf32>
    %c3_68 = arith.constant 3 : index
    %c0_69 = arith.constant 0 : index
    %180 = memref.load %arg2[%c3_68, %c0_69] : memref<4x10xf32, #tpu.memory_space<smem>>
    %181 = vector.broadcast %180 : f32 to vector<14x128xf32>
    %182 = arith.mulf %179, %181 : vector<14x128xf32>
    %183 = vector.extract_strided_slice %177 {offsets = [0, 0], sizes = [14, 128], strides = [1, 1]} : vector<16x128xf32> to vector<14x128xf32>
    %c3_70 = arith.constant 3 : index
    %c1_71 = arith.constant 1 : index
    %184 = memref.load %arg2[%c3_70, %c1_71] : memref<4x10xf32, #tpu.memory_space<smem>>
    %185 = vector.broadcast %184 : f32 to vector<14x128xf32>
    %186 = arith.mulf %183, %185 : vector<14x128xf32>
    %187 = arith.addf %182, %186 : vector<14x128xf32>
    %188 = vector.extract_strided_slice %178 {offsets = [0, 0], sizes = [14, 128], strides = [1, 1]} : vector<16x128xf32> to vector<14x128xf32>
    %c3_72 = arith.constant 3 : index
    %c2_73 = arith.constant 2 : index
    %189 = memref.load %arg2[%c3_72, %c2_73] : memref<4x10xf32, #tpu.memory_space<smem>>
    %190 = vector.broadcast %189 : f32 to vector<14x128xf32>
    %191 = arith.mulf %188, %190 : vector<14x128xf32>
    %192 = arith.addf %187, %191 : vector<14x128xf32>
    %193 = vector.extract_strided_slice %176 {offsets = [1, 0], sizes = [14, 128], strides = [1, 1]} : vector<16x128xf32> to vector<14x128xf32>
    %c3_74 = arith.constant 3 : index
    %c3_75 = arith.constant 3 : index
    %194 = memref.load %arg2[%c3_74, %c3_75] : memref<4x10xf32, #tpu.memory_space<smem>>
    %195 = vector.broadcast %194 : f32 to vector<14x128xf32>
    %196 = arith.mulf %193, %195 : vector<14x128xf32>
    %197 = arith.addf %192, %196 : vector<14x128xf32>
    %198 = vector.extract_strided_slice %177 {offsets = [1, 0], sizes = [14, 128], strides = [1, 1]} : vector<16x128xf32> to vector<14x128xf32>
    %c3_76 = arith.constant 3 : index
    %c4_77 = arith.constant 4 : index
    %199 = memref.load %arg2[%c3_76, %c4_77] : memref<4x10xf32, #tpu.memory_space<smem>>
    %200 = vector.broadcast %199 : f32 to vector<14x128xf32>
    %201 = arith.mulf %198, %200 : vector<14x128xf32>
    %202 = arith.addf %197, %201 : vector<14x128xf32>
    %203 = vector.extract_strided_slice %178 {offsets = [1, 0], sizes = [14, 128], strides = [1, 1]} : vector<16x128xf32> to vector<14x128xf32>
    %c3_78 = arith.constant 3 : index
    %c5_79 = arith.constant 5 : index
    %204 = memref.load %arg2[%c3_78, %c5_79] : memref<4x10xf32, #tpu.memory_space<smem>>
    %205 = vector.broadcast %204 : f32 to vector<14x128xf32>
    %206 = arith.mulf %203, %205 : vector<14x128xf32>
    %207 = arith.addf %202, %206 : vector<14x128xf32>
    %208 = vector.extract_strided_slice %176 {offsets = [2, 0], sizes = [14, 128], strides = [1, 1]} : vector<16x128xf32> to vector<14x128xf32>
    %c3_80 = arith.constant 3 : index
    %c6_81 = arith.constant 6 : index
    %209 = memref.load %arg2[%c3_80, %c6_81] : memref<4x10xf32, #tpu.memory_space<smem>>
    %210 = vector.broadcast %209 : f32 to vector<14x128xf32>
    %211 = arith.mulf %208, %210 : vector<14x128xf32>
    %212 = arith.addf %207, %211 : vector<14x128xf32>
    %213 = vector.extract_strided_slice %177 {offsets = [2, 0], sizes = [14, 128], strides = [1, 1]} : vector<16x128xf32> to vector<14x128xf32>
    %c3_82 = arith.constant 3 : index
    %c7_83 = arith.constant 7 : index
    %214 = memref.load %arg2[%c3_82, %c7_83] : memref<4x10xf32, #tpu.memory_space<smem>>
    %215 = vector.broadcast %214 : f32 to vector<14x128xf32>
    %216 = arith.mulf %213, %215 : vector<14x128xf32>
    %217 = arith.addf %212, %216 : vector<14x128xf32>
    %218 = vector.extract_strided_slice %178 {offsets = [2, 0], sizes = [14, 128], strides = [1, 1]} : vector<16x128xf32> to vector<14x128xf32>
    %c3_84 = arith.constant 3 : index
    %c8_85 = arith.constant 8 : index
    %219 = memref.load %arg2[%c3_84, %c8_85] : memref<4x10xf32, #tpu.memory_space<smem>>
    %220 = vector.broadcast %219 : f32 to vector<14x128xf32>
    %221 = arith.mulf %218, %220 : vector<14x128xf32>
    %222 = arith.addf %217, %221 : vector<14x128xf32>
    %c3_86 = arith.constant 3 : index
    %c9_87 = arith.constant 9 : index
    %223 = memref.load %arg2[%c3_86, %c9_87] : memref<4x10xf32, #tpu.memory_space<smem>>
    %224 = vector.broadcast %223 : f32 to vector<14x128xf32>
    %225 = arith.addf %222, %224 : vector<14x128xf32>
    %226 = vector.extract_strided_slice %0 {offsets = [3, 0], sizes = [1, 128], strides = [1, 1]} : vector<5x128xf32> to vector<1x128xf32>
    %227 = vector.shape_cast %226 : vector<1x128xf32> to vector<128xf32>
    %228 = vector.shape_cast %227 : vector<128xf32> to vector<1x128xf32>
    %229 = vector.broadcast %228 : vector<1x128xf32> to vector<14x128xf32>
    %230 = arith.mulf %225, %229 : vector<14x128xf32>
    %231 = arith.addf %173, %230 : vector<14x128xf32>
    %232 = vector.extract_strided_slice %0 {offsets = [4, 0], sizes = [1, 128], strides = [1, 1]} : vector<5x128xf32> to vector<1x128xf32>
    %233 = vector.shape_cast %232 : vector<1x128xf32> to vector<128xf32>
    %234 = vector.shape_cast %233 : vector<128xf32> to vector<1x128xf32>
    %235 = vector.broadcast %234 : vector<1x128xf32> to vector<14x128xf32>
    %236 = arith.addf %231, %235 : vector<14x128xf32>
    %c0_88 = arith.constant 0 : index
    %c0_89 = arith.constant 0 : index
    %c0_90 = arith.constant 0 : index
    %237 = vector.load %arg4[%c0_88, %c0_89, %c0_90] : memref<1x14x128xf32, #tpu.memory_space<vmem>>, vector<1x14x128xf32>
    %238 = vector.shape_cast %237 : vector<1x14x128xf32> to vector<14x128xf32>
    %239 = vector.shape_cast %236 : vector<14x128xf32> to vector<1x14x128xf32>
    tpu.vector_store %arg4[%c0_88, %c0_89, %c0_90], %239 {strides = array<i32>} : memref<1x14x128xf32, #tpu.memory_space<vmem>>, vector<1x14x128xf32>,
    return
  }
  func.func @transform_0(%arg0: i32) -> (i32, i32, i32, i32) {
    %c0_i32 = arith.constant 0 : i32
    %c0_i32_0 = arith.constant 0 : i32
    %c0_i32_1 = arith.constant 0 : i32
    %c0_i32_2 = arith.constant 0 : i32
    return %arg0, %c0_i32, %c0_i32_0, %c0_i32_1 : i32, i32, i32, i32
  }
  func.func @transform_1(%arg0: i32) -> (i32, i32) {
    %c0_i32 = arith.constant 0 : i32
    %c0_i32_0 = arith.constant 0 : i32
    %c0_i32_1 = arith.constant 0 : i32
    return %c0_i32, %c0_i32_0 : i32, i32
  }
  func.func @transform_2(%arg0: i32) -> (i32, i32) {
    %c0_i32 = arith.constant 0 : i32
    %c0_i32_0 = arith.constant 0 : i32
    %c0_i32_1 = arith.constant 0 : i32
    return %c0_i32, %c0_i32_0 : i32, i32
  }
  func.func @transform_3(%arg0: i32) -> (i32, i32, i32) {
    %c0_i32 = arith.constant 0 : i32
    %c0_i32_0 = arith.constant 0 : i32
    %c0_i32_1 = arith.constant 0 : i32
    return %arg0, %c0_i32, %c0_i32_0 : i32, i32, i32
  }
}

</mosaic_0001>

<bundles_post_ra>
// kernel: tpu_custom_call.1
= control target key start
LH: loop header
LB: loop body
LE: loop exit
PB: predicated region body
PF: predicated region fallthrough
CT: control target
= control target key end

     0   :  { %8 = vsyncpa [#allocation3], 0  ;;  %s1984_s0 = inlined_call_operand.hbm [shape: f32[2,4,16,130], index: 0, kind: input, shape index: {}]   ;;  %s1985_s1 = inlined_call_operand.hbm [shape: f32[4,10], index: 1, kind: input, shape index: {}]   ;;  %s1986_s2 = inlined_call_operand.hbm [shape: f32[5,128], index: 2, kind: input, shape index: {}]   ;;  %s1987_s3 = inlined_call_operand.vmem [shape: f32[2,14,128], index: 3, kind: output, shape index: {}]  }
   0x1   :  { %10 = vsyncpa [#allocation3 + $0x1], 0 }
   0x2   :  { %11 = vsyncpa [#allocation4], 0 }
   0x3   :  { %12 = vsyncpa [#allocation7], 0  ;;  %s1444_s12 = smov 0   ;;  %s1446_s13 = smov 0  }
   0x4   :  { %s1448_s14 = smov 0   ;;  %s1450_s15 = smov 0  }
   0x5 LB: > { %s1463_s16 = sadd.s32 4294967295, %s1416_s15   ;;  %s1466_s17 = sadd.s32 1, %s1416_s15   ;;  %s1416_s15 = sphi %s1450_s15, %s1995_s15   ;;  %s1412_s14 = sphi %s1448_s14, %s1994_s14   ;;  %s1408_s13 = sphi %s1446_s13, %s1993_s13   ;;  %s1404_s12 = sphi %s1444_s12, %s1992_s12  }
   0x6   : > { %s22_s18 = ssub.s32 %s1416_s15, %s1466_s17  ;;  %s25_s19 = sadd.s32 1, %s1412_s14 }
   0x7   : > { %p23_p0 = scmp.eq.s32.totalorder %s22_s18, 0  ;;  %p32_p1 = scmp.ne.s32.totalorder %s1412_s14, %s1408_s13 }
   0x8   : > { %p33_p2 = scmp.eq.s32.totalorder %s1416_s15, 0  ;;  %p38_p3 = scmp.ne.s32.totalorder %s1408_s13, %s1404_s12 }
   0x9   : > { %s1476_s20 = scalar_select %p23_p0, %s1412_s14, %s25_s19  }
   0xa   : > { %p1478_p4 = por %p33_p2, %p32_p1  ;;  %p39_p5 = scmp.eq.s32.totalorder %s1463_s16, 0 }
   0xb   : > { %p1167_p6 = scmp.ge.s32.totalorder %s1416_s15, 1  ;;  %p117_p7 = scmp.lt.s32.totalorder %s1416_s15, 3 }
   0xc   : > { %p1487_p8 = por %p39_p5, %p38_p3  ;;  %s129_s26 = sshll.u32 %s1985_s1, 4  ;;  %s130_s26 = int_to_ptr.hbm [resolvable:$true] %s129_s26 }
   0xd   : > { %p1491_p9 = pnand %p1167_p6, %p117_p7  ;;  %p1258_p11 = scmp.lt.s32.totalorder %s1416_s15, 2 }
   0xe   : > { %s139_s29 = sshll.u32 %s1986_s2, 4  ;;  %s1418_s4 = smov [#allocation6]   ;;  %s140_s29 = int_to_ptr.hbm [resolvable:$true] %s139_s29 }
   0xf   : > { %p1245_p10 = pneg %p1491_p9  ;;  %p1508_p13 = pnand %p1258_p11, %p1478_p4 }
  0x10   : > { %s141_s5 = sshll.u32 %s1418_s4, 4  ;;  %s1419_s6 = smov [#allocation5]   ;;  %s142_s5 = int_to_ptr.vmem [resolvable:$true] %s141_s5 }
  0x11   : > { %p1246_p12 = pnand %p1245_p10, %p39_p5  ;;  %s152_s7 = sand.u32 1, %s1412_s14  }
  0x12   : > { %s1233_s8 = sshll.u32 %s1416_s15, 7  ;;  %s1171_s9 = sshll.u32 %s152_s7, 7 }
  0x13   : > { %1248 = dma.hbm_to_smem (!%p1246_p12), %s130_s26, 64, %s1419_s6, [#allocation4]  }
  0x14   : > { %1251 = dma.hbm_to_vmem [thread:$0]  (!%p1246_p12), %s140_s29, 128, %s142_s5, [#allocation7]  }
  0x15   : > { %s161_s12 = scalar_lea.hbm %s1984_s0, %s1233_s8  ;;  %s156_s19 = scalar_lea.vmem [#allocation2], %s1171_s9 }
  0x16   : > { %s162_s18 = sshll.u32 %s161_s12, 4  ;;  %s164_s21 = sshll.u32 %s156_s19, 4  ;;  %s163_s18 = int_to_ptr.hbm [resolvable:$true] %s162_s18  ;;  %s165_s21 = int_to_ptr.vmem [resolvable:$true] %s164_s21 }
  0x17   : > { %s153_s24 = scalar_lea.sflag [#allocation3], %s152_s7  ;;  %s1344_s25 = sshra.s32 %s163_s18, 4  ;;  %s1345_s25 = int_to_ptr.hbm [resolvable:$true] %s1344_s25 }
  0x18   : > { %s1346_s27 = scalar_lea.hbm %s1345_s25, 128  ;;  %p1348_p1 = pneg %p1508_p13 }
  0x19   : > { %p1347_p0 = scmp.ne.s32.totalorder %s1345_s25, %s1346_s27  ;;  %s1351_s28 = scalar_lea.hbm %s1984_s0, 256 }
  0x1a   : > { %p1352_p4 = scmp.lt.s32.totalorder %s1345_s25, %s1984_s0  ;;  %p1353_p6 = scmp.lt.s32.totalorder %s1351_s28, %s1346_s27 }
  0x1b   : > { %p1349_p2 = pnand %p1348_p1, %p1347_p0 }
  0x1c   : > { %p1354_p7 = por %p1353_p6, %p1352_p4 }
  0x1d   : > { %p1350_p3 = pneg %p1349_p2 }
  0x1f   : > { %p1355_p10 = pnand %p1354_p7, %p1350_p3 }
  0x21   : > { %1358 = shalt.err (!%p1355_p10)
}
  0x22   : > { %s1420_s5 = smov 256   ;;  %s1421_s6 = smov 16  }
  0x23   : > { %1255 = dma.hbm_to_vmem [thread:$0]  (!%p1508_p13), %s163_s18, 2048, %s165_s21, %s153_s24, %s1420_s5, %s1420_s5, %s1421_s6  }
  0x24   : > { %176 = sbr.rel (%p1491_p9) target bundleno = 433 (0x1b1), region = 32  ;;  %s178_s7 = sand.u32 (!%p1491_p9), 1, %s1408_s13  }
  0x25   : > { %s1175_s8 = sshll.u32 (!%p1491_p9), %s178_s7, 7  ;;  %s179_s9 = scalar_lea.sflag (!%p1491_p9), [#allocation3], %s178_s7 }
  0x26   : > { %s1530_s10 = scalar_lea.vmem (!%p1491_p9), [#allocation2], %s1175_s8 }
  0x29   : > { %1391 = dma.done.wait (%p1487_p8), %s179_s9, 2048  }
  0x2a   : > { %1393 = vsyncadd (%p1487_p8), %s179_s9, 4294965248 }
  0x2b   : > { %1395 = dma.done.wait (%p39_p5), [#allocation4], 64  }
  0x2c   : > { %1397 = vsyncadd (%p39_p5), [#allocation4], 4294967232 }
  0x2d   : > { %1399 = dma.done.wait (%p39_p5), [#allocation7], 128  }
  0x2e   : > { %1401 = vsyncadd (%p39_p5), [#allocation7], 4294967168 }
  0x2f   : > { %198 = sfence }
  0x30   : > { %s1180_s23 = sld [smem:[#allocation5 + $0x1]]  ;;  %v1545_v0 = vld [vmem:[%s1530_s10 + $0x10] sm:$0xff]  ;;  %v1548_v1 = vld [vmem:[%s1530_s10] sm:$0xff]  ;;  %s1422_s11 = smov 127   ;;  %v1556_v7 = vld [vmem:[%s1530_s10 + $0x18] sm:$0xff]  ;;  %vm287_vm0 = vcmask 1046528  }
  0x31   : > { %s1181_s22 = sld [smem:[#allocation5 + $0x2]]  ;;  %v1559_v8 = vld [vmem:[%s1530_s10 + $0x8] sm:$0xff]  ;;  %s1423_s12 = smov 126   ;;  %vm361_vm1 = vcmask 1045504   ;;  %v1615_v60 = vld [vmem:[%s1530_s10 + $0x20] sm:$0xff]  ;;  %v1621_v63 = vld [vmem:[%s1530_s10 + $0x30] sm:$0xff] }
  0x32   : > { %s1183_s30 = sld [smem:[#allocation5 + $0x4]]  ;;  %v1612_v58 = vld [vmem:[%s1530_s10 + $0x28] sm:$0xff]  ;;  %vm274_vm2 = vcmask 1031168   ;;  %vm249_vm3 = vcmask 1039360   ;;  %p217_p5 = scmp.lt.s32.totalorder %s1463_s16, 1 }
  0x33   : > { %s1184_s18 = sld [smem:[#allocation5 + $0x5]] }
  0x34   : > { %s1186_s19 = sld [smem:[#allocation5 + $0x7]]  ;;  %s1997_s16 = smov (!%p217_p5, %s1463_s16), 1 }
  0x35   : > { %s1187_s21 = sld [smem:[#allocation5 + $0x8]] }
  0x36   : > { %v232_v2 = vstv %s1180_s23  ;;  %s1194_s24 = sld [smem:[#allocation5 + $0x81]] }
  0x37   : > { %v235_v3 = vmul.f32 %v232_v2, %v1545_v0  ;;  %v233_v4 = vmul.f32 %v232_v2, %v1548_v1  ;;  %v257_v5 = vstv %s1181_s22  ;;  %v236_v9 = vmul.f32 %v232_v2, %v1556_v7  ;;  %s1195_s25 = sld [smem:[#allocation5 + $0x82]] }
  0x38   : > { %v258_v6 = vmul.f32 %v257_v5, %v1548_v1  ;;  %v234_v10 = vmul.f32 %v232_v2, %v1559_v8  ;;  %v296_v11 = vstv %s1183_s30  ;;  %v259_v12 = vmul.f32 %v257_v5, %v1559_v8  ;;  %s1197_s27 = sld [smem:[#allocation5 + $0x84]] }
  0x39   : > { %245 = vrot.lane.b32.xlu1 %v235_v3, %s1422_s11  ;;  %241 = vrot.lane.b32.xlu0 %v233_v4, %s1422_s11  ;;  %v297_v13 = vmul.f32 %v296_v11, %v1548_v1  ;;  %v299_v14 = vmul.f32 %v296_v11, %v1545_v0  ;;  %v261_v16 = vmul.f32 %v257_v5, %v1556_v7  ;;  %v326_v24 = vstv %s1184_s18  ;;  %v1627_v4 = vld [vmem:[%s1530_s10 + $0x38] sm:$0xff]  ;;  %s1198_s15 = sld [smem:[#allocation5 + $0x85]] }
  0x3a   : > { %266 = vrot.lane.b32.xlu2 %v258_v6, %s1423_s12  ;;  %v260_v17 = vmul.f32 %v257_v5, %v1545_v0  ;;  %v298_v19 = vmul.f32 %v296_v11, %v1559_v8  ;;  %v300_v20 = vmul.f32 %v296_v11, %v1556_v7  ;;  %v328_v25 = vmul.f32 %v326_v24, %v1559_v8  ;;  %s1200_s26 = sld [smem:[#allocation5 + $0x87]] }
  0x3b   : > { %v305_v15 = vrot.slane %v297_v13, 1  ;;  %v306_v18 = vrot.slane %v299_v14, 1  ;;  %v330_v27 = vmul.f32 %v326_v24, %v1556_v7  ;;  %v327_v28 = vmul.f32 %v326_v24, %v1548_v1  ;;  %s1201_s28 = sld [smem:[#allocation5 + $0x88]] }
  0x3c   : > { %v308_v22 = vrot.slane %v298_v19, 1  ;;  %v309_v23 = vrot.slane %v300_v20, 1  ;;  %v329_v29 = vmul.f32 %v326_v24, %v1545_v0  ;;  %v338_v30 = vrot.slane %v328_v25, 1  ;;  %s1675_s29 = sld [smem:[#allocation5]] }
  0x3d   : > { %v307_v21 = vsel %vm287_vm0, %v305_v15, %v306_v18  ;;  %v339_v31 = vrot.slane %v330_v27, 1  ;;  %v335_v32 = vrot.slane %v327_v28, 1  ;;  %v370_v34 = vstv %s1186_s19  ;;  %s1208_s4 = sld [smem:[#allocation5 + $0x101]] }
  0x3e   : > { %v310_v26 = vsel %vm287_vm0, %v308_v22, %v309_v23  ;;  %v336_v33 = vrot.slane %v329_v29, 1  ;;  %v371_v37 = vmul.f32 %v370_v34, %v1548_v1  ;;  %v373_v38 = vmul.f32 %v370_v34, %v1545_v0  ;;  %s1182_s5 = sld [smem:[#allocation5 + $0x3]] }
  0x3f   : > { %v340_v35 = vsel %vm287_vm0, %v338_v30, %v339_v31  ;;  %v372_v39 = vmul.f32 %v370_v34, %v1559_v8  ;;  %v374_v42 = vmul.f32 %v370_v34, %v1556_v7  ;;  %v400_v46 = vstv %s1187_s21  ;;  %s1209_s6 = sld [smem:[#allocation5 + $0x102]] }
  0x40   : > { %v337_v36 = vsel %vm287_vm0, %v335_v32, %v336_v33  ;;  %v379_v40 = vrot.slane %v371_v37, 2  ;;  %v380_v41 = vrot.slane %v373_v38, 2  ;;  %v401_v48 = vmul.f32 %v400_v46, %v1548_v1  ;;  %s1211_s7 = sld [smem:[#allocation5 + $0x104]] }
  0x41   : > { %247 = vrot.lane.b32.xlu1 %v236_v9, %s1422_s11  ;;  %243 = vrot.lane.b32.xlu0 %v234_v10, %s1422_s11  ;;  %v382_v43 = vrot.slane %v372_v39, 2  ;;  %v383_v45 = vrot.slane %v374_v42, 2  ;;  %v403_v49 = vmul.f32 %v400_v46, %v1545_v0  ;;  %v402_v52 = vmul.f32 %v400_v46, %v1559_v8  ;;  %s1713_s8 = sld [smem:[#allocation5 + $0x6]] }
  0x42   : > { %268 = vrot.lane.b32.xlu2 %v259_v12, %s1423_s12  ;;  %v381_v44 = vsel %vm361_vm1, %v379_v40, %v380_v41  ;;  %v409_v50 = vrot.slane %v401_v48, 2  ;;  %v404_v53 = vmul.f32 %v400_v46, %v1556_v7  ;;  %v446_v59 = vstv %s1194_s24  ;;  %s1212_s9 = sld [smem:[#allocation5 + $0x105]] }
  0x43   : > { %v384_v47 = vsel %vm361_vm1, %v382_v43, %v383_v45  ;;  %v410_v51 = vrot.slane %v403_v49, 2  ;;  %v412_v55 = vrot.slane %v402_v52, 2  ;;  %v448_v61 = vmul.f32 %v1612_v58, %v446_v59  ;;  %s1214_s23 = sld [smem:[#allocation5 + $0x107]] }
  0x44   : > { %v413_v56 = vrot.slane %v404_v53, 2  ;;  %v447_v62 = vmul.f32 %v1615_v60, %v446_v59  ;;  %v449_v2 = vmul.f32 %v1621_v63, %v446_v59  ;;  %v470_v3 = vstv %s1195_s25  ;;  %s1215_s22 = sld [smem:[#allocation5 + $0x108]] }
  0x45   : > { %v411_v54 = vsel %vm361_vm1, %v409_v50, %v410_v51  ;;  %v471_v5 = vmul.f32 %v1615_v60, %v470_v3  ;;  %v450_v6 = vmul.f32 %v1627_v4, %v446_v59  ;;  %v507_v7 = vstv %s1197_s27  ;;  %s1775_s30 = sld [smem:[#allocation5 + $0x80]] }
  0x46   : > { %v414_v57 = vsel %vm361_vm1, %v412_v55, %v413_v56  ;;  %v472_v8 = vmul.f32 %v1612_v58, %v470_v3  ;;  %v508_v9 = vmul.f32 %v1615_v60, %v507_v7  ;;  %v510_v10 = vmul.f32 %v1621_v63, %v507_v7  ;;  %s1222_s18 = sld [smem:[#allocation5 + $0x181]] }
  0x47   : > { %v474_v12 = vmul.f32 %v1627_v4, %v470_v3  ;;  %v473_v13 = vmul.f32 %v1621_v63, %v470_v3  ;;  %v509_v14 = vmul.f32 %v1612_v58, %v507_v7  ;;  %v511_v15 = vmul.f32 %v1627_v4, %v507_v7  ;;  %v1687_v3 = vld [vmem:[%s1530_s10 + $0x48] sm:$0xff]  ;;  %s1196_s19 = sld [smem:[#allocation5 + $0x83]] }
  0x48   : > { %v516_v11 = vrot.slane %v508_v9, 1  ;;  %v537_v20 = vstv %s1198_s15  ;;  %v580_v30 = vstv %s1200_s26  ;;  %s1223_s21 = sld [smem:[#allocation5 + $0x182]] }
  0x49   : > { %272 = vrot.lane.b32.xlu1 %v261_v16, %s1423_s12  ;;  %270 = vrot.lane.b32.xlu0 %v260_v17, %s1423_s12  ;;  %v517_v16 = vrot.slane %v510_v10, 1  ;;  %v520_v19 = vrot.slane %v511_v15, 1  ;;  %v539_v22 = vmul.f32 %v1612_v58, %v537_v20  ;;  %v538_v24 = vmul.f32 %v1615_v60, %v537_v20  ;;  %v1700_v15 = vld [vmem:[%s1530_s10 + $0x50] sm:$0xff]  ;;  %s1225_s24 = sld [smem:[#allocation5 + $0x184]] }
  0x4a   : > { %311 = vrot.lane.b32.xlu2 %v307_v21, %s1422_s11  ;;  %v540_v25 = vmul.f32 %v1621_v63, %v537_v20  ;;  %v581_v34 = vmul.f32 %v1615_v60, %v580_v30  ;;  %v584_v39 = vmul.f32 %v1627_v4, %v580_v30  ;;  %s1823_s25 = sld [smem:[#allocation5 + $0x86]] }
  0x4b   : > { %v518_v17 = vsel %vm287_vm0, %v516_v11, %v517_v16  ;;  %v546_v28 = vrot.slane %v538_v24, 1  ;;  %s1228_s27 = sld [smem:[#allocation5 + $0x187]] }
  0x4c   : > { %v547_v29 = vrot.slane %v540_v25, 1  ;;  %v589_v37 = vrot.slane %v581_v34, 2  ;;  %v593_v43 = vrot.slane %v584_v39, 2  ;;  %s1229_s15 = sld [smem:[#allocation5 + $0x188]] }
  0x4d   : > { %s1869_s26 = sld [smem:[#allocation5 + $0x9]] }
  0x51   : > { %315 = vrot.lane.b32.xlu1 %v306_v18, %s1422_s11  ;;  %313 = vrot.lane.b32.xlu0 %v310_v26, %s1422_s11  ;;  %v519_v18 = vrot.slane %v509_v14, 1  ;;  %v549_v26 = vrot.slane %v539_v22, 1  ;;  %v1709_v22 = vld [vmem:[%s1530_s10 + $0x58] sm:$0xff] }
  0x52   : > { %317 = vrot.lane.b32.xlu2 %v309_v23, %s1422_s11  ;;  %v541_v23 = vmul.f32 %v1627_v4, %v537_v20 }
  0x53   : > { %v521_v21 = vsel %vm287_vm0, %v519_v18, %v520_v19 }
  0x54   : > { %v550_v27 = vrot.slane %v541_v23, 1 }
  0x56   : > { %v551_v32 = vsel %vm287_vm0, %v549_v26, %v550_v27 }
  0x59   : > { %343 = vrot.lane.b32.xlu1 %v340_v35, %s1423_s12  ;;  %341 = vrot.lane.b32.xlu0 %v337_v36, %s1423_s12  ;;  %v583_v35 = vmul.f32 %v1621_v63, %v580_v30  ;;  %v582_v36 = vmul.f32 %v1612_v58, %v580_v30 }
  0x5a   : > { %345 = vrot.lane.b32.xlu2 %v336_v33, %s1423_s12  ;;  %v548_v33 = vsel %vm287_vm0, %v546_v28, %v547_v29 }
  0x5b   : > { %v590_v38 = vrot.slane %v583_v35, 2  ;;  %v592_v40 = vrot.slane %v582_v36, 2 }
  0x5d   : > { %v591_v42 = vsel %vm361_vm1, %v589_v37, %v590_v38  ;;  %v594_v46 = vsel %vm361_vm1, %v592_v40, %v593_v43 }
  0x61   : > { %385 = vrot.lane.b32.xlu1 %v381_v44, %s1422_s11  ;;  %347 = vrot.lane.b32.xlu0 %v339_v31, %s1423_s12 }
  0x62   : > { %387 = vrot.lane.b32.xlu2 %v384_v47, %s1422_s11 }
  0x69   : > { %391 = vrot.lane.b32.xlu1 %v383_v45, %s1422_s11  ;;  %389 = vrot.lane.b32.xlu0 %v380_v41, %s1422_s11  ;;  %v610_v45 = vstv %s1201_s28  ;;  %s1877_s28 = sld [smem:[#allocation5 + $0x89]] }
  0x6a   : > { %415 = vrot.lane.b32.xlu2 %v411_v54, %s1423_s12  ;;  %v611_v47 = vmul.f32 %v1615_v60, %v610_v45  ;;  %v613_v48 = vmul.f32 %v1621_v63, %v610_v45  ;;  %v612_v52 = vmul.f32 %v1612_v58, %v610_v45  ;;  %v614_v53 = vmul.f32 %v1627_v4, %v610_v45 }
  0x6b   : > { %v658_v4 = vstv %s1208_s4  ;;  %s1210_s4 = sld [smem:[#allocation5 + $0x103]] }
  0x6c   : > { %v619_v49 = vrot.slane %v611_v47, 2  ;;  %v622_v55 = vrot.slane %v612_v52, 2  ;;  %v660_v11 = vmul.f32 %v1687_v3, %v658_v4  ;;  %v661_v18 = vmul.f32 %v1700_v15, %v658_v4 }
  0x71   : > { %419 = vrot.lane.b32.xlu1 %v410_v51, %s1423_s12  ;;  %417 = vrot.lane.b32.xlu0 %v414_v57, %s1423_s12  ;;  %v620_v51 = vrot.slane %v613_v48, 2 }
  0x72   : > { %421 = vrot.lane.b32.xlu2 %v413_v56, %s1423_s12  ;;  %v623_v56 = vrot.slane %v614_v53, 2 }
  0x73   : > { %v621_v54 = vsel %vm361_vm1, %v619_v49, %v620_v51 }
  0x79   : > { %457 = vrot.lane.b32.xlu1 %v448_v61, %s1422_s11  ;;  %455 = vrot.lane.b32.xlu0 %v447_v62, %s1422_s11  ;;  %v624_v61 = vsel %vm361_vm1, %v622_v55, %v623_v56  ;;  %v228_v62 = vstv %s1675_s29  ;;  %s1895_s29 = sld [smem:[#allocation5 + $0x100]] }
  0x7a   : > { %459 = vrot.lane.b32.xlu2 %v449_v2, %s1422_s11  ;;  %v229_v2 = vmul.f32 %v228_v62, %v1548_v1 }
  0x81   : > { %479 = vrot.lane.b32.xlu1 %v471_v5, %s1423_s12  ;;  %461 = vrot.lane.b32.xlu0 %v450_v6, %s1422_s11  ;;  %v1690_v5 = vld [vmem:[%s1530_s10 + $0x40] sm:$0xff] }
  0x82   : > { %481 = vrot.lane.b32.xlu2 %v472_v8, %s1423_s12 }
  0x89   : > { %485 = vrot.lane.b32.xlu1 %v474_v12, %s1423_s12  ;;  %483 = vrot.lane.b32.xlu0 %v473_v13, %s1423_s12  ;;  %v659_v12 = vmul.f32 %v1690_v5, %v658_v4  ;;  %v282_v13 = vstv %s1182_s5  ;;  %s1224_s5 = sld [smem:[#allocation5 + $0x183]] }
  0x8a   : > { %522 = vrot.lane.b32.xlu2 %v518_v17, %s1422_s11  ;;  %v284_v20 = vmul.f32 %v282_v13, %v1545_v0 }
  0x8c   : > { %v289_v28 = vrot.slane %v284_v20, 1 }
  0x91   : > { %526 = vrot.lane.b32.xlu1 %v517_v16, %s1422_s11  ;;  %524 = vrot.lane.b32.xlu0 %v521_v21, %s1422_s11  ;;  %v230_v16 = vmul.f32 %v228_v62, %v1545_v0  ;;  %v682_v21 = vstv %s1209_s6  ;;  %v749_v62 = vstv %s1212_s9  ;;  %s1221_s6 = sld [smem:[#allocation5 + $0x180]]  ;;  %s1234_s9 = sshll.u32 %s1997_s16, 4 }
  0x92   : > { %528 = vrot.lane.b32.xlu2 %v520_v19, %s1422_s11  ;;  %v283_v19 = vmul.f32 %v282_v13, %v1548_v1  ;;  %v683_v30 = vmul.f32 %v1690_v5, %v682_v21  ;;  %v684_v34 = vmul.f32 %v1687_v3, %v682_v21 }
  0x94   : > { %v267_v31 = vpop.permute.xlu2 %266 }
  0x99   : > { %554 = vrot.lane.b32.xlu1 %v551_v32, %s1423_s12  ;;  %552 = vrot.lane.b32.xlu0 %v548_v33, %s1423_s12  ;;  %v719_v33 = vstv %s1211_s7  ;;  %s1227_s7 = sld [smem:[#allocation5 + $0x186]] }
  0x9a   : > { %556 = vrot.lane.b32.xlu2 %v547_v29, %s1423_s12  ;;  %v720_v36 = vmul.f32 %v1690_v5, %v719_v33  ;;  %v722_v37 = vmul.f32 %v1700_v15, %v719_v33  ;;  %v723_v52 = vmul.f32 %v1709_v22, %v719_v33 }
  0x9c   : > { %v269_v41 = vpop.permute.xlu2 %268  ;;  %v728_v47 = vrot.slane %v720_v36, 1 }
  0x9d   : > { %v275_v44 = vsel %vm274_vm2, %v267_v31, %v269_v41  ;;  %v662_v31 = vmul.f32 %v1709_v22, %v658_v4 }
  0xa1   : > { %595 = vrot.lane.b32.xlu1 %v591_v42, %s1422_s11  ;;  %558 = vrot.lane.b32.xlu0 %v550_v27, %s1423_s12  ;;  %v288_v27 = vrot.slane %v283_v19, 1  ;;  %v686_v42 = vmul.f32 %v1709_v22, %v682_v21 }
  0xa2   : > { %597 = vrot.lane.b32.xlu2 %v594_v46, %s1422_s11  ;;  %v356_v46 = vstv %s1713_s8  ;;  %s1230_s8 = sld [smem:[#allocation5 + $0x189]] }
  0xa3   : > { %v290_v35 = vsel %vm287_vm0, %v288_v27, %v289_v28  ;;  %v357_v55 = vmul.f32 %v356_v46, %v1548_v1 }
  0xa4   : > { %v1671_v50 = vpop.permute.xlu2 %311 }
  0xa5   : > { %v362_v4 = vrot.slane %v357_v55, 2 }
  0xa9   : > { %601 = vrot.lane.b32.xlu1 %v593_v43, %s1422_s11  ;;  %599 = vrot.lane.b32.xlu0 %v590_v38, %s1422_s11  ;;  %v685_v43 = vmul.f32 %v1700_v15, %v682_v21 }
  0xaa   : > { %625 = vrot.lane.b32.xlu2 %v621_v54, %s1423_s12  ;;  %v729_v54 = vrot.slane %v722_v37, 1 }
  0xab   : > { %v246_v57 = vpop.permute.xlu1 %245  ;;  %v242_v59 = vpop.permute.xlu0 %241 }
  0xac   : > { %v318_v58 = vpop.permute.xlu2 %317 }
  0xb1   : > { %629 = vrot.lane.b32.xlu1 %v620_v51, %s1423_s12  ;;  %627 = vrot.lane.b32.xlu0 %v624_v61, %s1423_s12  ;;  %v721_v51 = vmul.f32 %v1687_v3, %v719_v33 }
  0xb2   : > { %631 = vrot.lane.b32.xlu2 %v623_v56, %s1423_s12  ;;  %v358_v56 = vmul.f32 %v356_v46, %v1545_v0 }
  0xb3   : > { %v248_v6 = vpop.permute.xlu1 %247  ;;  %v244_v7 = vpop.permute.xlu0 %243 }
  0xb4   : > { %v251_v8 = vsel %vm249_vm3, %v246_v57, %v248_v6  ;;  %v250_v9 = vsel %vm249_vm3, %v242_v59, %v244_v7  ;;  %v1697_v14 = vpop.permute.xlu2 %345  ;;  %v730_v57 = vsel %vm287_vm0, %v728_v47, %v729_v54  ;;  %v732_v59 = vrot.slane %v723_v52, 1 }
  0xb5   : > { %v254_v10 = vadd.f32 %v250_v9, %v229_v2  ;;  %v255_v23 = vadd.f32 %v251_v8, %v230_v16  ;;  %v363_v1 = vrot.slane %v358_v56, 2  ;;  %v751_v8 = vmul.f32 %v1687_v3, %v749_v62 }
  0xb6   : > { %v753_v9 = vmul.f32 %v1709_v22, %v749_v62 }
  0xb7   : > { %v279_v17 = vadd.f32 %v275_v44, %v254_v10  ;;  %v750_v10 = vmul.f32 %v1690_v5, %v749_v62  ;;  %v761_v13 = vrot.slane %v751_v8, 1  ;;  %v1796_v8 = vld [vmem:[%s1530_s10 + $0x68] sm:$0xff] }
  0xb8   : > { %v762_v16 = vrot.slane %v753_v9, 1  ;;  %v870_v9 = vstv %s1222_s18 }
  0xb9   : > { %669 = vrot.lane.b32.xlu1 %v660_v11, %s1422_s11  ;;  %667 = vrot.lane.b32.xlu0 %v659_v12, %s1422_s11  ;;  %v293_v41 = vadd.f32 %v290_v35, %v279_v17  ;;  %v752_v11 = vmul.f32 %v1700_v15, %v749_v62  ;;  %v364_v12 = vsel %vm361_vm1, %v362_v4, %v363_v1  ;;  %v758_v17 = vrot.slane %v750_v10, 1  ;;  %v1799_v10 = vld [vmem:[%s1530_s10 + $0x60] sm:$0xff] }
  0xba   : > { %671 = vrot.lane.b32.xlu2 %v661_v18, %s1422_s11 }
  0xbb   : > { %v273_v24 = vpop.permute.xlu1 %272  ;;  %v271_v25 = vpop.permute.xlu0 %270  ;;  %v759_v18 = vrot.slane %v752_v11, 1 }
  0xbc   : > { %v276_v26 = vsel %vm274_vm2, %v271_v25, %v273_v24  ;;  %v388_v32 = vpop.permute.xlu2 %387 }
  0xbd   : > { %v280_v29 = vadd.f32 %v276_v26, %v255_v23  ;;  %v792_v23 = vstv %s1214_s23 }
  0xbe   : > { %v795_v33 = vmul.f32 %v1700_v15, %v792_v23  ;;  %v796_v35 = vmul.f32 %v1709_v22, %v792_v23 }
  0xbf   : > { %v294_v39 = vadd.f32 %v289_v28, %v280_v29  ;;  %v763_v29 = vsel %vm287_vm0, %v761_v13, %v762_v16 }
  0xc1   : > { %691 = vrot.lane.b32.xlu1 %v683_v30, %s1423_s12  ;;  %673 = vrot.lane.b32.xlu0 %v662_v31, %s1422_s11  ;;  %v760_v30 = vsel %vm287_vm0, %v758_v17, %v759_v18  ;;  %v793_v31 = vmul.f32 %v1690_v5, %v792_v23 }
  0xc2   : > { %693 = vrot.lane.b32.xlu2 %v684_v34, %s1423_s12  ;;  %v794_v34 = vmul.f32 %v1687_v3, %v792_v23 }
  0xc3   : > { %v316_v38 = vpop.permute.xlu1 %315  ;;  %v314_v40 = vpop.permute.xlu0 %313 }
  0xc4   : > { %v320_v44 = vsel %vm249_vm3, %v316_v38, %v318_v58  ;;  %v319_v45 = vsel %vm249_vm3, %v1671_v50, %v314_v40  ;;  %v1732_v53 = vpop.permute.xlu2 %415  ;;  %v731_v50 = vrot.slane %v721_v51, 1  ;;  %v804_v40 = vrot.slane %v794_v34, 2 }
  0xc5   : > { %v324_v48 = vadd.f32 %v320_v44, %v294_v39  ;;  %v323_v49 = vadd.f32 %v319_v45, %v293_v41  ;;  %v805_v44 = vrot.slane %v796_v35, 2  ;;  %v822_v45 = vstv %s1215_s22 }
  0xc6   : > { %v733_v0 = vsel %vm287_vm0, %v731_v50, %v732_v59  ;;  %v823_v47 = vmul.f32 %v1690_v5, %v822_v45 }
  0xc7   : > { %v806_v46 = vsel %vm361_vm1, %v804_v40, %v805_v44  ;;  %v931_v40 = vstv %s1225_s24 }
  0xc8   : > { %v831_v55 = vrot.slane %v823_v47, 2 }
  0xc9   : > { %697 = vrot.lane.b32.xlu1 %v686_v42, %s1423_s12  ;;  %695 = vrot.lane.b32.xlu0 %v685_v43, %s1423_s12 }
  0xca   : > { %734 = vrot.lane.b32.xlu2 %v730_v57, %s1422_s11 }
  0xcb   : > { %v344_v58 = vpop.permute.xlu1 %343  ;;  %v342_v61 = vpop.permute.xlu0 %341 }
  0xcc   : > { %v349_v2 = vsel %vm274_vm2, %v342_v61, %v344_v58  ;;  %v422_v7 = vpop.permute.xlu2 %421  ;;  %v824_v58 = vmul.f32 %v1687_v3, %v822_v45  ;;  %v826_v61 = vmul.f32 %v1709_v22, %v822_v45 }
  0xcd   : > { %v353_v6 = vadd.f32 %v349_v2, %v323_v49 }
  0xce   : > { %v835_v2 = vrot.slane %v826_v61, 2 }
  0xcf   : > { %v367_v20 = vadd.f32 %v364_v12, %v353_v6  ;;  %v442_v6 = vstv %s1775_s30  ;;  %s221_s30 = scalar_lea.vmem %s1987_s3, %s1234_s9 }
  0xd1   : > { %738 = vrot.lane.b32.xlu1 %v729_v54, %s1422_s11  ;;  %736 = vrot.lane.b32.xlu0 %v733_v0, %s1422_s11 }
  0xd2   : > { %740 = vrot.lane.b32.xlu2 %v732_v59, %s1422_s11 }
  0xd3   : > { %v386_v19 = vpop.permute.xlu1 %385  ;;  %v348_v21 = vpop.permute.xlu0 %347 }
  0xd4   : > { %v393_v24 = vsel %vm249_vm3, %v386_v19, %v388_v32  ;;  %v350_v25 = vsel %vm274_vm2, %v1697_v14, %v348_v21  ;;  %v1753_v28 = vpop.permute.xlu2 %459  ;;  %v801_v14 = vrot.slane %v793_v31, 2  ;;  %v802_v32 = vrot.slane %v795_v33, 2 }
  0xd5   : > { %v397_v26 = vadd.f32 %v393_v24, %v367_v20  ;;  %v354_v27 = vadd.f32 %v350_v25, %v324_v48  ;;  %v825_v48 = vmul.f32 %v1700_v15, %v822_v45  ;;  %v872_v19 = vmul.f32 %v1796_v8, %v870_v9  ;;  %v1810_v24 = vld [vmem:[%s1530_s10 + $0x70] sm:$0xff] }
  0xd6   : > { %v803_v43 = vsel %vm361_vm1, %v801_v14, %v802_v32  ;;  %v871_v20 = vmul.f32 %v1799_v10, %v870_v9  ;;  %v494_v21 = vstv %s1196_s19  ;;  %v444_v25 = vmul.f32 %v1621_v63, %v442_v6 }
  0xd7   : > { %v368_v37 = vadd.f32 %v363_v1, %v354_v27  ;;  %v832_v59 = vrot.slane %v825_v48, 2  ;;  %v495_v27 = vmul.f32 %v1615_v60, %v494_v21 }
  0xd9   : > { %766 = vrot.lane.b32.xlu1 %v763_v29, %s1423_s12  ;;  %764 = vrot.lane.b32.xlu0 %v760_v30, %s1423_s12  ;;  %v833_v62 = vsel %vm361_vm1, %v831_v55, %v832_v59  ;;  %v496_v29 = vmul.f32 %v1621_v63, %v494_v21  ;;  %v1819_v30 = vld [vmem:[%s1530_s10 + $0x78] sm:$0xff]  ;;  %s1226_s10 = sld [smem:[#allocation5 + $0x185]]  ;;  %v567_v55 = vstv %s1823_s25 }
  0xda   : > { %768 = vrot.lane.b32.xlu2 %v759_v18, %s1423_s12 }
  0xdb   : > { %v392_v36 = vpop.permute.xlu1 %391  ;;  %v390_v38 = vpop.permute.xlu0 %389  ;;  %v500_v35 = vrot.slane %v496_v29, 1 }
  0xdc   : > { %v394_v39 = vsel %vm249_vm3, %v390_v38, %v392_v36  ;;  %v482_v42 = vpop.permute.xlu2 %481  ;;  %v874_v38 = vmul.f32 %v1819_v30, %v870_v9 }
  0xdd   : > { %v398_v41 = vadd.f32 %v394_v39, %v368_v37 }
  0xe1   : > { %807 = vrot.lane.b32.xlu1 %v803_v43, %s1422_s11  ;;  %770 = vrot.lane.b32.xlu0 %v762_v16, %s1423_s12  ;;  %v932_v43 = vmul.f32 %v1799_v10, %v931_v40 }
  0xe2   : > { %809 = vrot.lane.b32.xlu2 %v806_v46, %s1422_s11 }
  0xe3   : > { %v420_v49 = vpop.permute.xlu1 %419  ;;  %v418_v51 = vpop.permute.xlu0 %417 }
  0xe4   : > { %v424_v52 = vsel %vm274_vm2, %v420_v49, %v422_v7  ;;  %v423_v54 = vsel %vm274_vm2, %v1732_v53, %v418_v51  ;;  %v1781_v50 = vpop.permute.xlu2 %522  ;;  %v834_v53 = vrot.slane %v824_v58, 2  ;;  %v443_v7 = vmul.f32 %v1615_v60, %v442_v6 }
  0xe5   : > { %v1777_v56 = vadd.f32 %v424_v52, %v398_v41  ;;  %v1779_v57 = vadd.f32 %v423_v54, %v397_v26  ;;  %v873_v26 = vmul.f32 %v1810_v24, %v870_v9  ;;  %v569_v6 = vmul.f32 %v1621_v63, %v567_v55 }
  0xe6   : > { %v836_v0 = vsel %vm361_vm1, %v834_v53, %v835_v2  ;;  %v935_v53 = vmul.f32 %v1819_v30, %v931_v40  ;;  %v961_v9 = vstv %s1226_s10 }
  0xe9   : > { %813 = vrot.lane.b32.xlu1 %v805_v44, %s1422_s11  ;;  %811 = vrot.lane.b32.xlu0 %v802_v32, %s1422_s11  ;;  %v499_v32 = vrot.slane %v495_v27, 1  ;;  %v934_v44 = vmul.f32 %v1810_v24, %v931_v40 }
  0xea   : > { %837 = vrot.lane.b32.xlu2 %v833_v62, %s1423_s12  ;;  %v933_v62 = vmul.f32 %v1796_v8, %v931_v40 }
  0xeb   : > { %v458_v4 = vpop.permute.xlu1 %457  ;;  %v456_v1 = vpop.permute.xlu0 %455 }
  0xec   : > { %v463_v3 = vsel %vm249_vm3, %v456_v1, %v458_v4  ;;  %v529_v22 = vpop.permute.xlu2 %528  ;;  %v941_v4 = vrot.slane %v934_v44, 1  ;;  %v568_v1 = vmul.f32 %v1615_v60, %v567_v55  ;;  %v573_v60 = vrot.slane %v569_v6, 2 }
  0xed   : > { %v467_v11 = vadd.f32 %v463_v3, %v443_v7 }
  0xf1   : > { %841 = vrot.lane.b32.xlu1 %v832_v59, %s1423_s12  ;;  %839 = vrot.lane.b32.xlu0 %v836_v0, %s1423_s12  ;;  %v940_v59 = vrot.slane %v932_v43, 1 }
  0xf2   : > { %843 = vrot.lane.b32.xlu2 %v835_v2, %s1423_s12 }
  0xf3   : > { %v480_v12 = vpop.permute.xlu1 %479  ;;  %v462_v13 = vpop.permute.xlu0 %461  ;;  %v942_v3 = vsel %vm287_vm0, %v940_v59, %v941_v4  ;;  %v1034_v59 = vstv %s1229_s15 }
  0xf4   : > { %v487_v16 = vsel %vm274_vm2, %v480_v12, %v482_v42  ;;  %v464_v17 = vsel %vm249_vm3, %v1753_v28, %v462_v13  ;;  %v1807_v23 = vpop.permute.xlu2 %556  ;;  %v894_v28 = vstv %s1223_s21  ;;  %v501_v42 = vsel %vm287_vm0, %v499_v32, %v500_v35 }
  0xf5   : > { %v491_v18 = vadd.f32 %v487_v16, %v467_v11  ;;  %v468_v31 = vadd.f32 %v464_v17, %v444_v25  ;;  %v895_v37 = vmul.f32 %v1799_v10, %v894_v28  ;;  %v896_v41 = vmul.f32 %v1796_v8, %v894_v28 }
  0xf6   : > { %v898_v49 = vmul.f32 %v1819_v30, %v894_v28  ;;  %v897_v51 = vmul.f32 %v1810_v24, %v894_v28  ;;  %v572_v12 = vrot.slane %v568_v1, 2  ;;  %v963_v17 = vmul.f32 %v1796_v8, %v961_v9 }
  0xf7   : > { %v504_v47 = vadd.f32 %v501_v42, %v491_v18  ;;  %v965_v18 = vmul.f32 %v1819_v30, %v961_v9 }
  0xf8   : > { %v574_v21 = vsel %vm361_vm1, %v572_v12, %v573_v60  ;;  %v973_v25 = vrot.slane %v963_v17, 1  ;;  %v1036_v17 = vmul.f32 %v1796_v8, %v1034_v59 }
  0xf9   : > { %881 = vrot.lane.b32.xlu1 %v872_v19, %s1422_s11  ;;  %879 = vrot.lane.b32.xlu0 %v871_v20, %s1422_s11  ;;  %v962_v19 = vmul.f32 %v1799_v10, %v961_v9  ;;  %v964_v20 = vmul.f32 %v1810_v24, %v961_v9 }
  0xfa   : > { %883 = vrot.lane.b32.xlu2 %v873_v26, %s1422_s11  ;;  %v974_v26 = vrot.slane %v965_v18, 1  ;;  %v1038_v18 = vmul.f32 %v1819_v30, %v1034_v59 }
  0xfb   : > { %v486_v33 = vpop.permute.xlu1 %485  ;;  %v484_v34 = vpop.permute.xlu0 %483  ;;  %v970_v27 = vrot.slane %v962_v19, 1  ;;  %v971_v29 = vrot.slane %v964_v20, 1 }
  0xfc   : > { %v488_v14 = vsel %vm274_vm2, %v484_v34, %v486_v33  ;;  %v598_v39 = vpop.permute.xlu2 %597  ;;  %v1004_v34 = vstv %s1228_s27 }
  0xfd   : > { %v492_v36 = vadd.f32 %v488_v14, %v468_v31  ;;  %v972_v40 = vsel %vm287_vm0, %v970_v27, %v971_v29  ;;  %v1007_v42 = vmul.f32 %v1810_v24, %v1004_v34  ;;  %v1008_v44 = vmul.f32 %v1819_v30, %v1004_v34 }
  0xfe   : > { %v1047_v27 = vrot.slane %v1038_v18, 2 }
  0xff   : > { %v505_v46 = vadd.f32 %v500_v35, %v492_v36  ;;  %v1014_v43 = vrot.slane %v1007_v42, 2  ;;  %v1017_v55 = vrot.slane %v1008_v44, 2 }
 0x101   : > { %903 = vrot.lane.b32.xlu1 %v895_v37, %s1423_s12  ;;  %885 = vrot.lane.b32.xlu0 %v874_v38, %s1422_s11  ;;  %v975_v38 = vsel %vm287_vm0, %v973_v25, %v974_v26 }
 0x102   : > { %905 = vrot.lane.b32.xlu2 %v896_v41, %s1423_s12  ;;  %v1005_v41 = vmul.f32 %v1799_v10, %v1004_v34 }
 0x103   : > { %v527_v45 = vpop.permute.xlu1 %526  ;;  %v525_v48 = vpop.permute.xlu0 %524 }
 0x104   : > { %v531_v52 = vsel %vm249_vm3, %v527_v45, %v529_v22  ;;  %v530_v54 = vsel %vm249_vm3, %v1781_v50, %v525_v48  ;;  %v1842_v2 = vpop.permute.xlu2 %625  ;;  %v943_v50 = vrot.slane %v933_v62, 1  ;;  %v944_v22 = vrot.slane %v935_v53, 1 }
 0x105   : > { %v535_v58 = vadd.f32 %v531_v52, %v505_v46  ;;  %v534_v61 = vadd.f32 %v530_v54, %v504_v47  ;;  %v1035_v53 = vmul.f32 %v1799_v10, %v1034_v59 }
 0x106   : > { %v945_v63 = vsel %vm287_vm0, %v943_v50, %v944_v22 }
 0x107   : > { %v1043_v9 = vrot.slane %v1035_v53, 2 }
 0x109   : > { %909 = vrot.lane.b32.xlu1 %v898_v49, %s1423_s12  ;;  %907 = vrot.lane.b32.xlu0 %v897_v51, %s1423_s12 }
 0x10a   : > { %946 = vrot.lane.b32.xlu2 %v942_v3, %s1422_s11 }
 0x10b   : > { %v555_v0 = vpop.permute.xlu1 %554  ;;  %v553_v7 = vpop.permute.xlu0 %552 }
 0x10c   : > { %v560_v11 = vsel %vm274_vm2, %v553_v7, %v555_v0  ;;  %v632_v16 = vpop.permute.xlu2 %631 }
 0x10d   : > { %v564_v13 = vadd.f32 %v560_v11, %v534_v61  ;;  %v1881_v61 = vld [vmem:[#allocation6] sm:$0x1f] }
 0x10e   : > { %v433_v6 = vperm.slane %v1881_v61, 0 }
 0x10f   : > { %v577_v31 = vadd.f32 %v574_v21, %v564_v13 }
 0x111   : > { %950 = vrot.lane.b32.xlu1 %v941_v4, %s1422_s11  ;;  %948 = vrot.lane.b32.xlu0 %v945_v63, %s1422_s11  ;;  %v1037_v4 = vmul.f32 %v1810_v24, %v1034_v59 }
 0x112   : > { %952 = vrot.lane.b32.xlu2 %v944_v22, %s1422_s11  ;;  %v640_v22 = vstv %s1877_s28 }
 0x113   : > { %v596_v28 = vpop.permute.xlu1 %595  ;;  %v559_v33 = vpop.permute.xlu0 %558  ;;  %v1044_v63 = vrot.slane %v1037_v4, 2 }
 0x114   : > { %v603_v14 = vsel %vm249_vm3, %v596_v28, %v598_v39  ;;  %v561_v32 = vsel %vm274_vm2, %v1807_v23, %v559_v33  ;;  %v1863_v37 = vpop.permute.xlu2 %671  ;;  %v1006_v39 = vmul.f32 %v1796_v8, %v1004_v34  ;;  %v1013_v23 = vrot.slane %v1005_v41, 2 }
 0x115   : > { %v607_v35 = vadd.f32 %v603_v14, %v577_v31  ;;  %v565_v36 = vadd.f32 %v561_v32, %v535_v58  ;;  %v430_v58 = vstv %s1869_s26  ;;  %v654_v31 = vstv %s1895_s29 }
 0x116   : > { %v1016_v49 = vrot.slane %v1006_v39, 2  ;;  %v1015_v54 = vsel %vm361_vm1, %v1013_v23, %v1014_v43  ;;  %v432_v1 = vadd.f32 %v430_v58, %v1777_v56  ;;  %v431_v11 = vadd.f32 %v430_v58, %v1779_v57 }
 0x117   : > { %v578_v46 = vadd.f32 %v573_v60, %v565_v36  ;;  %v643_v56 = vperm.slane %v1881_v61, 1  ;;  %v1046_v57 = vrot.slane %v1036_v17, 2  ;;  %v655_v32 = vmul.f32 %v1690_v5, %v654_v31 }
 0x118   : > { %v1018_v62 = vsel %vm361_vm1, %v1016_v49, %v1017_v55  ;;  %v435_v20 = vmul.f32 %v433_v6, %v432_v1  ;;  %v434_v21 = vmul.f32 %v433_v6, %v431_v11  ;;  %v706_v39 = vstv %s1210_s4 }
 0x119   : > { %978 = vrot.lane.b32.xlu1 %v975_v38, %s1423_s12  ;;  %976 = vrot.lane.b32.xlu0 %v972_v40, %s1423_s12  ;;  %v1048_v14 = vsel %vm361_vm1, %v1046_v57, %v1047_v27  ;;  %v707_v44 = vmul.f32 %v1690_v5, %v706_v39 }
 0x11a   : > { %980 = vrot.lane.b32.xlu2 %v971_v29, %s1423_s12 }
 0x11b   : > { %v602_v45 = vpop.permute.xlu1 %601  ;;  %v600_v47 = vpop.permute.xlu0 %599 }
 0x11c   : > { %v604_v48 = vsel %vm249_vm3, %v600_v47, %v602_v45  ;;  %v694_v52 = vpop.permute.xlu2 %693  ;;  %v708_v45 = vmul.f32 %v1700_v15, %v706_v39 }
 0x11d   : > { %v608_v51 = vadd.f32 %v604_v48, %v578_v46 }
 0x121   : > { %1019 = vrot.lane.b32.xlu1 %v1015_v54, %s1422_s11  ;;  %982 = vrot.lane.b32.xlu0 %v974_v26, %s1423_s12  ;;  %v712_v54 = vrot.slane %v708_v45, 1 }
 0x122   : > { %1021 = vrot.lane.b32.xlu2 %v1018_v62, %s1422_s11 }
 0x123   : > { %v630_v3 = vpop.permute.xlu1 %629  ;;  %v628_v50 = vpop.permute.xlu0 %627 }
 0x124   : > { %v634_v0 = vsel %vm274_vm2, %v630_v3, %v632_v16  ;;  %v633_v7 = vsel %vm274_vm2, %v1842_v2, %v628_v50  ;;  %v735_v13 = vpop.permute.xlu2 %734  ;;  %v1045_v2 = vsel %vm361_vm1, %v1043_v9, %v1044_v63 }
 0x125   : > { %v638_v12 = vadd.f32 %v634_v0, %v608_v51  ;;  %v637_v60 = vadd.f32 %v633_v7, %v607_v35  ;;  %v711_v51 = vrot.slane %v707_v44, 1 }
 0x127   : > { %v642_v19 = vadd.f32 %v640_v22, %v638_v12  ;;  %v641_v16 = vadd.f32 %v640_v22, %v637_v60 }
 0x129   : > { %v645_v25 = vmul.f32 %v643_v56, %v642_v19  ;;  %v644_v26 = vmul.f32 %v643_v56, %v641_v16  ;;  %1025 = vrot.lane.b32.xlu1 %v1017_v55, %s1422_s11  ;;  %1023 = vrot.lane.b32.xlu0 %v1014_v43, %s1422_s11  ;;  %v656_v43 = vmul.f32 %v1700_v15, %v654_v31  ;;  %s1213_s11 = sld [smem:[#allocation5 + $0x106]] }
 0x12a   : > { %1049 = vrot.lane.b32.xlu2 %v1045_v2, %s1423_s12 }
 0x12b   : > { %v1904_v29 = vadd.f32 %v645_v25, %v435_v20  ;;  %v1906_v8 = vadd.f32 %v644_v26, %v434_v21  ;;  %v670_v30 = vpop.permute.xlu1 %669  ;;  %v668_v28 = vpop.permute.xlu0 %667 }
 0x12c   : > { %v675_v33 = vsel %vm249_vm3, %v668_v28, %v670_v30  ;;  %v741_v34 = vpop.permute.xlu2 %740 }
 0x12d   : > { %v679_v35 = vadd.f32 %v675_v33, %v655_v32 }
 0x12f   : > { %v779_v50 = vstv %s1213_s11 }
 0x130   : > { %v780_v0 = vmul.f32 %v1690_v5, %v779_v50  ;;  %v781_v7 = vmul.f32 %v1700_v15, %v779_v50 }
 0x131   : > { %1053 = vrot.lane.b32.xlu1 %v1044_v63, %s1423_s12  ;;  %1051 = vrot.lane.b32.xlu0 %v1048_v14, %s1423_s12 }
 0x132   : > { %1055 = vrot.lane.b32.xlu2 %v1047_v27, %s1423_s12  ;;  %v784_v56 = vrot.slane %v780_v0, 2  ;;  %v785_v60 = vrot.slane %v781_v7, 2  ;;  %s1216_s12 = sld [smem:[#allocation5 + $0x109]] }
 0x133   : > { %v692_v36 = vpop.permute.xlu1 %691  ;;  %v674_v38 = vpop.permute.xlu0 %673 }
 0x134   : > { %v699_v40 = vsel %vm274_vm2, %v692_v36, %v694_v52  ;;  %v676_v41 = vsel %vm249_vm3, %v1863_v37, %v674_v38  ;;  %v769_v23 = vpop.permute.xlu2 %768  ;;  %v713_v37 = vsel %vm287_vm0, %v711_v51, %v712_v54  ;;  %v786_v17 = vsel %vm361_vm1, %v784_v56, %v785_v60 }
 0x135   : > { %v703_v42 = vadd.f32 %v699_v40, %v679_v35  ;;  %v680_v46 = vadd.f32 %v676_v41, %v656_v43  ;;  %v855_v36 = vperm.slane %v1881_v61, 2 }
 0x137   : > { %v716_v62 = vadd.f32 %v713_v37, %v703_v42 }
 0x138   : > { %v852_v33 = vstv %s1216_s12 }
 0x13b   : > { %v698_v47 = vpop.permute.xlu1 %697  ;;  %v696_v48 = vpop.permute.xlu0 %695 }
 0x13c   : > { %v700_v49 = vsel %vm274_vm2, %v696_v48, %v698_v47  ;;  %v810_v55 = vpop.permute.xlu2 %809 }
 0x13d   : > { %v704_v52 = vadd.f32 %v700_v49, %v680_v46 }
 0x13f   : > { %v717_v58 = vadd.f32 %v712_v54, %v704_v52 }
 0x143   : > { %v739_v59 = vpop.permute.xlu1 %738  ;;  %v737_v53 = vpop.permute.xlu0 %736 }
 0x144   : > { %v743_v4 = vsel %vm249_vm3, %v739_v59, %v741_v34  ;;  %v742_v1 = vsel %vm249_vm3, %v735_v13, %v737_v53  ;;  %v838_v22 = vpop.permute.xlu2 %837  ;;  %v918_v59 = vstv %s1224_s5 }
 0x145   : > { %v747_v6 = vadd.f32 %v743_v4, %v717_v58  ;;  %v746_v3 = vadd.f32 %v742_v1, %v716_v62  ;;  %v866_v62 = vstv %s1221_s6  ;;  %v919_v53 = vmul.f32 %v1799_v10, %v918_v59 }
 0x146   : > { %v920_v4 = vmul.f32 %v1810_v24, %v918_v59  ;;  %v867_v1 = vmul.f32 %v1799_v10, %v866_v62 }
 0x147   : > { %v923_v7 = vrot.slane %v919_v53, 1 }
 0x14b   : > { %v767_v9 = vpop.permute.xlu1 %766  ;;  %v765_v11 = vpop.permute.xlu0 %764 }
 0x14c   : > { %v772_v12 = vsel %vm274_vm2, %v765_v11, %v767_v9  ;;  %v844_v18 = vpop.permute.xlu2 %843  ;;  %v924_v9 = vrot.slane %v920_v4, 1 }
 0x14d   : > { %v776_v63 = vadd.f32 %v772_v12, %v746_v3 }
 0x14f   : > { %v789_v13 = vadd.f32 %v786_v17, %v776_v63 }
 0x153   : > { %v808_v19 = vpop.permute.xlu1 %807  ;;  %v771_v16 = vpop.permute.xlu0 %770 }
 0x154   : > { %v815_v20 = vsel %vm249_vm3, %v808_v19, %v810_v55  ;;  %v773_v2 = vsel %vm274_vm2, %v769_v23, %v771_v16  ;;  %v884_v15 = vpop.permute.xlu2 %883  ;;  %v925_v19 = vsel %vm287_vm0, %v923_v7, %v924_v9 }
 0x155   : > { %v819_v5 = vadd.f32 %v815_v20, %v789_v13  ;;  %v777_v21 = vadd.f32 %v773_v2, %v747_v6  ;;  %v868_v6 = vmul.f32 %v1810_v24, %v866_v62 }
 0x157   : > { %v790_v26 = vadd.f32 %v785_v60, %v777_v21  ;;  %v991_v60 = vstv %s1227_s7 }
 0x158   : > { %v992_v13 = vmul.f32 %v1799_v10, %v991_v60  ;;  %v993_v16 = vmul.f32 %v1810_v24, %v991_v60 }
 0x15b   : > { %v814_v25 = vpop.permute.xlu1 %813  ;;  %v812_v57 = vpop.permute.xlu0 %811 }
 0x15c   : > { %v816_v27 = vsel %vm249_vm3, %v812_v57, %v814_v25  ;;  %v906_v32 = vpop.permute.xlu2 %905  ;;  %v997_v57 = vrot.slane %v993_v16, 2 }
 0x15d   : > { %v820_v30 = vadd.f32 %v816_v27, %v790_v26  ;;  %v996_v26 = vrot.slane %v992_v13, 2 }
 0x163   : > { %v842_v28 = vpop.permute.xlu1 %841  ;;  %v840_v31 = vpop.permute.xlu0 %839 }
 0x164   : > { %v846_v34 = vsel %vm274_vm2, %v842_v28, %v844_v18  ;;  %v845_v14 = vsel %vm274_vm2, %v838_v22, %v840_v31  ;;  %v947_v46 = vpop.permute.xlu2 %946 }
 0x165   : > { %v850_v35 = vadd.f32 %v846_v34, %v820_v30  ;;  %v849_v38 = vadd.f32 %v845_v14, %v819_v5  ;;  %v998_v34 = vsel %vm361_vm1, %v996_v26, %v997_v57 }
 0x167   : > { %v854_v40 = vadd.f32 %v852_v33, %v850_v35  ;;  %v853_v41 = vadd.f32 %v852_v33, %v849_v38 }
 0x169   : > { %v857_v42 = vmul.f32 %v855_v36, %v854_v40  ;;  %v856_v39 = vmul.f32 %v855_v36, %v853_v41 }
 0x16b   : > { %v1937_v23 = vadd.f32 %v857_v42, %v1904_v29  ;;  %v1940_v43 = vadd.f32 %v856_v39, %v1906_v8  ;;  %v882_v44 = vpop.permute.xlu1 %881  ;;  %v880_v45 = vpop.permute.xlu0 %879 }
 0x16c   : > { %v953_v49 = vpop.permute.xlu2 %952  ;;  %v887_v3 = vsel %vm249_vm3, %v880_v45, %v882_v44  ;;  %v1064_v44 = vstv %s1230_s8 }
 0x16d   : > { %v891_v11 = vadd.f32 %v887_v3, %v867_v1 }
 0x173   : > { %v904_v47 = vpop.permute.xlu1 %903  ;;  %v886_v48 = vpop.permute.xlu0 %885 }
 0x174   : > { %v981_v52 = vpop.permute.xlu2 %980  ;;  %v888_v50 = vsel %vm249_vm3, %v884_v15, %v886_v48  ;;  %v911_v22 = vsel %vm274_vm2, %v904_v47, %v906_v32  ;;  %v1067_v48 = vperm.slane %v1881_v61, 3 }
 0x175   : > { %v892_v12 = vadd.f32 %v888_v50, %v868_v6  ;;  %v915_v17 = vadd.f32 %v911_v22, %v891_v11 }
 0x177   : > { %v928_v15 = vadd.f32 %v925_v19, %v915_v17 }
 0x17b   : > { %v910_v51 = vpop.permute.xlu1 %909  ;;  %v908_v54 = vpop.permute.xlu0 %907 }
 0x17c   : > { %v1022_v8 = vpop.permute.xlu2 %1021  ;;  %v912_v0 = vsel %vm274_vm2, %v908_v54, %v910_v51 }
 0x17d   : > { %v916_v18 = vadd.f32 %v912_v0, %v892_v12 }
 0x17f   : > { %v929_v21 = vadd.f32 %v924_v9, %v916_v18 }
 0x183   : > { %v951_v55 = vpop.permute.xlu1 %950  ;;  %v949_v37 = vpop.permute.xlu0 %948 }
 0x184   : > { %v1050_v20 = vpop.permute.xlu2 %1049  ;;  %v955_v2 = vsel %vm249_vm3, %v951_v55, %v953_v49  ;;  %v954_v5 = vsel %vm249_vm3, %v947_v46, %v949_v37  ;;  %v1072_v55 = vperm.slane %v1881_v61, 4 }
 0x185   : > { %v959_v30 = vadd.f32 %v955_v2, %v929_v21  ;;  %v958_v28 = vadd.f32 %v954_v5, %v928_v15 }
 0x18b   : > { %v979_v58 = vpop.permute.xlu1 %978  ;;  %v977_v29 = vpop.permute.xlu0 %976 }
 0x18c   : > { %v984_v25 = vsel %vm274_vm2, %v977_v29, %v979_v58  ;;  %v1056_v38 = vpop.permute.xlu2 %1055 }
 0x18d   : > { %v988_v24 = vadd.f32 %v984_v25, %v958_v28 }
 0x18f   : > { %v1001_v35 = vadd.f32 %v998_v34, %v988_v24 }
 0x193   : > { %v1020_v56 = vpop.permute.xlu1 %1019  ;;  %v983_v63 = vpop.permute.xlu0 %982 }
 0x194   : > { %v985_v27 = vsel %vm274_vm2, %v981_v52, %v983_v63  ;;  %v1027_v14 = vsel %vm249_vm3, %v1020_v56, %v1022_v8 }
 0x195   : > { %v989_v33 = vadd.f32 %v985_v27, %v959_v30  ;;  %v1031_v40 = vadd.f32 %v1027_v14, %v1001_v35 }
 0x197   : > { %v1002_v36 = vadd.f32 %v997_v57, %v989_v33 }
 0x19b   : > { %v1026_v31 = vpop.permute.xlu1 %1025  ;;  %v1024_v10 = vpop.permute.xlu0 %1023 }
 0x19c   : > { %v1028_v32 = vsel %vm249_vm3, %v1024_v10, %v1026_v31 }
 0x19d   : > { %v1032_v41 = vadd.f32 %v1028_v32, %v1002_v36 }
 0x1a3   : > { %v1054_v42 = vpop.permute.xlu1 %1053  ;;  %v1052_v39 = vpop.permute.xlu0 %1051 }
 0x1a4   : > { %v1058_v45 = vsel %vm274_vm2, %v1054_v42, %v1056_v38  ;;  %v1057_v46 = vsel %vm274_vm2, %v1050_v20, %v1052_v39 }
 0x1a5   : > { %v1062_v47 = vadd.f32 %v1058_v45, %v1032_v41  ;;  %v1061_v49 = vadd.f32 %v1057_v46, %v1031_v40 }
 0x1a7   : > { %v1066_v51 = vadd.f32 %v1064_v44, %v1062_v47  ;;  %v1065_v54 = vadd.f32 %v1064_v44, %v1061_v49 }
 0x1a9   : > { %v1069_v52 = vmul.f32 %v1067_v48, %v1066_v51  ;;  %v1068_v37 = vmul.f32 %v1067_v48, %v1065_v54 }
 0x1ab   : > { %v1071_v59 = vadd.f32 %v1069_v52, %v1937_v23  ;;  %v1070_v58 = vadd.f32 %v1068_v37, %v1940_v43 }
 0x1ad   : > { %v1074_v29 = vadd.f32 %v1072_v55, %v1071_v59  ;;  %v1073_v62 = vadd.f32 %v1072_v55, %v1070_v58 }
 0x1af   : > { %1076 = vst [vmem:[%s221_s30 + $0x8] sm:$0x3f] %v1074_v29 }
 0x1b0   : > { %1075 = vst [vmem:[%s221_s30] sm:$0xff] %v1073_v62 }
 0x1b1 PF: > { %p15_p8 = scmp.ge.s32.totalorder %s1466_s17, 4   ;;  %s1992_s12 = smov %s1408_s13 }
 0x1b2   : > { %s1993_s13 = smov %s1412_s14  ;;  %s1994_s14 = smov %s1476_s20 }
 0x1b3   : > { %s1995_s15 = smov %s1466_s17  ;;  %17 = sbr.rel (!%p15_p8) target bundleno = 5 (0x5), region = 84 }
 0x1b8   :  { %1098 = vsyncpa [#allocation3], 1 }
 0x1b9   :  { %1100 = vsyncpa [#allocation3 + $0x1], 1 }
 0x1ba   :  { %1101 = vsyncpa [#allocation7], 1 }
 0x1bb   :  { %1102 = vsyncpa [#allocation4], 1 }
 0x1bc   :  { %1104 = vsyncpa [#allocation4 + $0x1], 1 }

</bundles_post_ra>
